<compile_context>
chip_gen: v7x
topology: tpu7x:2x2x1
jax: 0.10.0
libtpu: 0.0.40
codegen_flags: <defaults>
</compile_context>

<pallas_src>
import jax
import jax.numpy as jnp
from jax.experimental import pallas as pl
from jax.experimental.pallas import tpu as pltpu

# ---- problem sizes (small, consistent with the module's shape contract) ----
L = 8            # sequence length
N = 2            # batch
E = 32           # Es, source embedding dim
EP = 4           # Ep, position embedding dim
NHEAD = 4
HD = E // NHEAD
FF = 64          # feed-forward hidden dim
NUM_LAYERS = 2
G = NHEAD * N    # fused (head, batch) axis; g = h * N + n
EPS = 1e-5

W_ROWS = 3 * E + FF      # rows in the packed weight slab: Wqkv | Wo | W1 | W2
W_COLS = 3 * E           # columns (padded to the widest block, 3E)


def _layer_norm_2d(x, gamma, beta):
    # Single-pass LayerNorm: E[x] and E[x^2] are independent reductions.
    mean = jnp.mean(x, axis=-1, keepdims=True)
    mean_sq = jnp.mean(x * x, axis=-1, keepdims=True)
    var = mean_sq - mean * mean
    return (x - mean) * jax.lax.rsqrt(var + EPS) * gamma + beta


# ---------------------------------------------------------------------------
# Fused Pallas kernel: all encoder layers + final LayerNorm, one invocation
# ---------------------------------------------------------------------------
def encoder_kernel(x_ref, bias_ref, wslab_ref, bslab_ref, fnorm_ref, out_ref):
    """Whole TransformerEncoder in one kernel.

    x_ref:     (N, L, E)                     f32 activations
    bias_ref:  (NUM_LAYERS, G, L, L)         f32 hoisted positional bias, g = h*N + n
    wslab_ref: (NUM_LAYERS, W_ROWS, W_COLS)  bf16 packed [Wqkv; Wo; W1; W2]
    bslab_ref: (NUM_LAYERS, 8, W_COLS)       f32 packed [bqkv; b1; bo; b2; g1; be1; g2; be2]
    fnorm_ref: (2, E)                        f32 final-norm [gamma; beta]
    """
    xf = x_ref[...].reshape(N * L, E)                  # residual stream, (N*L, E) f32
    scale = 1.0 / (HD ** 0.5)

    for li in range(NUM_LAYERS):                       # static unroll (NUM_LAYERS == 2)
        wslab = wslab_ref[li]                          # (W_ROWS, W_COLS) bf16
        bslab = bslab_ref[li]                          # (8, W_COLS)      f32

        wqkv = wslab[0:E, :]                           # (E, 3E)
        wo = wslab[E:2 * E, 0:E]                       # (E, E)
        w1 = wslab[2 * E:3 * E, 0:FF]                  # (E, FF)
        w2 = wslab[3 * E:3 * E + FF, 0:E]              # (FF, E)

        bqkv = bslab[0:1, :]                           # (1, 3E)
        b1 = bslab[1:2, 0:FF]
        bo = bslab[2:3, 0:E]
        b2 = bslab[3:4, 0:E]
        g1 = bslab[4:5, 0:E]
        be1 = bslab[5:6, 0:E]
        g2 = bslab[6:7, 0:E]
        be2 = bslab[7:8, 0:E]

        # ---- fused dense QKV projection: one MXU push per layer ----
        qkv = jnp.dot(xf.astype(jnp.bfloat16), wqkv,
                      preferred_element_type=jnp.float32) + bqkv        # (N*L, 3E) f32

        def split_heads(off):
            # (N*L, E) block of qkv -> (G, L, HD) with g = h*N + n.
            # Lane slices + major-axis stack only (no lane->sublane reshapes).
            cols = [qkv[:, off + h * HD: off + (h + 1) * HD] for h in range(NHEAD)]
            return jnp.stack(cols, axis=0).reshape(G, L, HD).astype(jnp.bfloat16)

        q = split_heads(0)
        k = split_heads(E)
        v = split_heads(2 * E)

        # ---- scaled dot-product attention, batched over fused g = (head, batch) ----
        s = jnp.einsum('gqd,gkd->gqk', q, k,
                       preferred_element_type=jnp.float32) * scale + bias_ref[li]
        s = s - jnp.max(s, axis=-1, keepdims=True)     # stable softmax
        p = jnp.exp(s)
        denom = jnp.sum(p, axis=-1, keepdims=True)
        p = p * pl.reciprocal(denom, approx=True)      # EUP slot, keeps VALU free
        o = jnp.einsum('gqk,gkd->gqd', p.astype(jnp.bfloat16), v,
                       preferred_element_type=jnp.float32)              # (G, L, HD)

        # ---- merge heads (lane concat) + single dense output projection ----
        o4 = o.reshape(NHEAD, N * L, HD)
        o_flat = jnp.concatenate([o4[h] for h in range(NHEAD)], axis=-1)  # (N*L, E)
        attn = jnp.dot(o_flat.astype(jnp.bfloat16), wo,
                       preferred_element_type=jnp.float32) + bo

        # ---- residual + post-LN, then feed-forward (elementwise math in f32) ----
        y = _layer_norm_2d(xf + attn, g1, be1)
        h1 = jnp.maximum(
            jnp.dot(y.astype(jnp.bfloat16), w1,
                    preferred_element_type=jnp.float32) + b1, 0.0)
        ff = jnp.dot(h1.astype(jnp.bfloat16), w2,
                     preferred_element_type=jnp.float32) + b2
        xf = _layer_norm_2d(y + ff, g2, be2)

    # ---- final norm of the encoder stack ----
    gf = fnorm_ref[0:1, :]
    bf = fnorm_ref[1:2, :]
    out_ref[...] = _layer_norm_2d(xf, gf, bf).reshape(N, L, E)


# ---------------------------------------------------------------------------
# Wrapper
# ---------------------------------------------------------------------------
def transformer_encoder(src_lne, pos, box, kernel_params):
    """src_lne: (L, N, E), pos: (N, L, L, EP), box: (L, N, EP) -> (L, N, E)."""
    del box  # TODO(synk): box consumption inside the layer is unspecified in the source.
    wslab, bslab, wp_all, bp_all, fnorm = kernel_params

    x_nle = jnp.transpose(src_lne, (1, 0, 2))                      # (N, L, E)

    # Hoisted positional bias: bias[li, g=h*N+n, q, k] = sum_p pos[n,q,k,p]*Wp[li,p,h] + bp[li,h]
    bias = jnp.einsum('nqkp,lph->lhnqk', pos, wp_all) + bp_all[:, :, None, None, None]
    bias = bias.reshape(NUM_LAYERS, G, L, L).astype(jnp.float32)

    args = (x_nle, bias, wslab, bslab, fnorm)
    # NOTE: at this size everything is VMEM-resident; before scaling E/L/NUM_LAYERS,
    # move the layer axis to a grid dimension with BlockSpec streaming of the slabs.
    out = pl.pallas_call(
        encoder_kernel,
        out_shape=jax.ShapeDtypeStruct((N, L, E), jnp.float32),
        in_specs=[pl.BlockSpec(memory_space=pltpu.MemorySpace.VMEM) for _ in args],
        out_specs=pl.BlockSpec(memory_space=pltpu.MemorySpace.VMEM),
    )(*args)
    return jnp.transpose(out, (1, 0, 2))                           # (L, N, E)


# ---------------------------------------------------------------------------
# Parameter preparation: PyTorch-style per-layer tuples -> packed slabs
# ---------------------------------------------------------------------------
def prep_kernel_params(layer_params, final_norm_params):
    wslabs, bslabs, wps, bps = [], [], [], []

    for (wqkv, bqkv, wp, bp, wo, bo, w1, b1, w2, b2, g1, be1, g2, be2) in layer_params:
        # bf16 matmul-weight slab: rows [Wqkv(32) | Wo(32) | W1(32) | W2(64)], 96 cols.
        wslab = jnp.zeros((W_ROWS, W_COLS), jnp.float32)
        wslab = wslab.at[0:E, 0:3 * E].set(wqkv)
        wslab = wslab.at[E:2 * E, 0:E].set(wo)
        wslab = wslab.at[2 * E:3 * E, 0:FF].set(w1)
        wslab = wslab.at[3 * E:3 * E + FF, 0:E].set(w2)
        wslabs.append(wslab.astype(jnp.bfloat16))

        # f32 bias/LN slab: 8 rows x 96 cols.
        bslab = jnp.zeros((8, W_COLS), jnp.float32)
        bslab = bslab.at[0:1, 0:3 * E].set(bqkv)
        bslab = bslab.at[1:2, 0:FF].set(b1)
        bslab = bslab.at[2:3, 0:E].set(bo)
        bslab = bslab.at[3:4, 0:E].set(b2)
        bslab = bslab.at[4:5, 0:E].set(g1)
        bslab = bslab.at[5:6, 0:E].set(be1)
        bslab = bslab.at[6:7, 0:E].set(g2)
        bslab = bslab.at[7:8, 0:E].set(be2)
        bslabs.append(bslab)

        wps.append(wp)          # (EP, NHEAD) -- used in the wrapper's bias precompute
        bps.append(bp[0])       # (NHEAD,)

    gamma_f, beta_f = final_norm_params
    fnorm = jnp.concatenate([gamma_f, beta_f], axis=0)             # (2, E)

    return (jnp.stack(wslabs, axis=0),      # (NUM_LAYERS, W_ROWS, W_COLS) bf16
            jnp.stack(bslabs, axis=0),      # (NUM_LAYERS, 8, W_COLS)      f32
            jnp.stack(wps, axis=0),         # (NUM_LAYERS, EP, NHEAD)
            jnp.stack(bps, axis=0),         # (NUM_LAYERS, NHEAD)
            fnorm)                          # (2, E)


# ---------------------------------------------------------------------------
# Pure-JAX reference (same math, raw parameters, full f32) for a correctness check
# ---------------------------------------------------------------------------
def _ref_ln(x, gamma, beta):
    mean = jnp.mean(x, axis=-1, keepdims=True)
    var = jnp.mean((x - mean) ** 2, axis=-1, keepdims=True)
    return (x - mean) * jax.lax.rsqrt(var + EPS) * gamma + beta


def _ref_layer(x_nle, pos, params):
    (wqkv, bqkv, wp, bp, wo, bo, w1, b1, w2, b2, g1, be1, g2, be2) = params
    outs = []
    for b in range(N):
        x = x_nle[b]
        qkv = x @ wqkv + bqkv
        q, k, v = qkv[:, :E], qkv[:, E:2 * E], qkv[:, 2 * E:]
        bias = (pos[b].reshape(L * L, EP) @ wp + bp).reshape(L, L, NHEAD)
        heads = []
        for h in range(NHEAD):
            qh, kh, vh = (q[:, h * HD:(h + 1) * HD], k[:, h * HD:(h + 1) * HD],
                          v[:, h * HD:(h + 1) * HD])
            s = qh @ kh.T / (HD ** 0.5) + bias[:, :, h]
            p = jax.nn.softmax(s, axis=-1)
            heads.append(p @ vh)
        attn = jnp.concatenate(heads, axis=-1) @ wo + bo
        y = _ref_ln(x + attn, g1, be1)
        ff = jnp.maximum(y @ w1 + b1, 0.0) @ w2 + b2
        outs.append(_ref_ln(y + ff, g2, be2))
    return jnp.stack(outs, axis=0)


def _ref_encoder(src_lne, pos, layer_params, final_norm_params):
    x = jnp.transpose(src_lne, (1, 0, 2))
    for params in layer_params:
        x = _ref_layer(x, pos, params)
    gamma_f, beta_f = final_norm_params
    x = jnp.stack([_ref_ln(x[b], gamma_f, beta_f) for b in range(N)], axis=0)
    return jnp.transpose(x, (1, 0, 2))


# ---------------------------------------------------------------------------
def make_params():
    """Deterministic init of ONE encoder layer (deep-copied across NUM_LAYERS) + final norm."""
    keys = jax.random.split(jax.random.PRNGKey(0), 8)
    s = 0.02
    layer = (
        jax.random.normal(keys[0], (E, 3 * E), jnp.float32) * s,   # Wqkv
        jnp.zeros((1, 3 * E), jnp.float32),                        # bqkv
        jax.random.normal(keys[1], (EP, NHEAD), jnp.float32) * s,  # Wp  (pos -> head bias)
        jnp.zeros((1, NHEAD), jnp.float32),                        # bp
        jax.random.normal(keys[2], (E, E), jnp.float32) * s,       # Wo
        jnp.zeros((1, E), jnp.float32),                            # bo
        jax.random.normal(keys[3], (E, FF), jnp.float32) * s,      # W1
        jnp.zeros((1, FF), jnp.float32),                           # b1
        jax.random.normal(keys[4], (FF, E), jnp.float32) * s,      # W2
        jnp.zeros((1, E), jnp.float32),                            # b2
        jnp.ones((1, E), jnp.float32), jnp.zeros((1, E), jnp.float32),  # LN1
        jnp.ones((1, E), jnp.float32), jnp.zeros((1, E), jnp.float32),  # LN2
    )
    layer_params = [layer for _ in range(NUM_LAYERS)]   # _get_clones: identical copies
    final_norm_params = (jnp.ones((1, E), jnp.float32), jnp.zeros((1, E), jnp.float32))
    return layer_params, final_norm_params


if __name__ == "__main__":
    key = jax.random.PRNGKey(0)
    k_src, k_pos, k_box = jax.random.split(key, 3)
    src = jax.random.normal(k_src, (L, N, E), jnp.float32)        # (L, N, Es)
    pos = jax.random.normal(k_pos, (N, L, L, EP), jnp.float32)    # (N, L, L, Ep)
    box = jax.random.normal(k_box, (L, N, EP), jnp.float32)       # (L, N, Ep)

    layer_params, final_norm_params = make_params()
    kernel_params = prep_kernel_params(layer_params, final_norm_params)

    out = transformer_encoder(src, pos, box, kernel_params)
    out = jax.block_until_ready(out)

    ref = _ref_encoder(src, pos, layer_params, final_norm_params)
    assert out.shape == (L, N, E)
    # Tolerance accounts for bf16 MXU operands and the approximate EUP reciprocal in the
    # softmax; structural bugs would show O(0.1+) errors.
    assert jnp.allclose(out, ref, atol=2e-2, rtol=2e-2), "mismatch vs reference"

    print("KERNEL_OK")
</pallas_src>

<mosaic_0001>
module attributes {stable_mosaic.version = 11 : i64} {
  func.func @encoder_kernel(%arg0: memref<2x8x32xf32, #tpu.memory_space<vmem>>, %arg1: memref<2x8x8x8xf32, #tpu.memory_space<vmem>>, %arg2: memref<2x160x96xbf16, #tpu.memory_space<vmem>>, %arg3: memref<2x8x96xf32, #tpu.memory_space<vmem>>, %arg4: memref<2x32xf32, #tpu.memory_space<vmem>>, %arg5: memref<2x8x32xf32, #tpu.memory_space<vmem>>) attributes {dimension_semantics = [], scalar_prefetch = 0 : i64, scratch_operands = 0 : i64, tpu.core_type = #tpu.core_type<tc>} {
    %c0 = arith.constant 0 : index
    %c0_0 = arith.constant 0 : index
    %c0_1 = arith.constant 0 : index
    %0 = vector.load %arg0[%c0, %c0_0, %c0_1] : memref<2x8x32xf32, #tpu.memory_space<vmem>>, vector<2x8x32xf32>
    %1 = vector.shape_cast %0 : vector<2x8x32xf32> to vector<16x32xf32>
    %c0_2 = arith.constant 0 : index
    %c0_3 = arith.constant 0 : index
    %c0_4 = arith.constant 0 : index
    %2 = vector.load %arg2[%c0_2, %c0_3, %c0_4] : memref<2x160x96xbf16, #tpu.memory_space<vmem>>, vector<1x160x96xbf16>
    %3 = vector.shape_cast %2 : vector<1x160x96xbf16> to vector<160x96xbf16>
    %c0_5 = arith.constant 0 : index
    %c0_6 = arith.constant 0 : index
    %c0_7 = arith.constant 0 : index
    %4 = vector.load %arg3[%c0_5, %c0_6, %c0_7] : memref<2x8x96xf32, #tpu.memory_space<vmem>>, vector<1x8x96xf32>
    %5 = vector.shape_cast %4 : vector<1x8x96xf32> to vector<8x96xf32>
    %6 = vector.extract_strided_slice %3 {offsets = [0, 0], sizes = [32, 96], strides = [1, 1]} : vector<160x96xbf16> to vector<32x96xbf16>
    %7 = vector.extract_strided_slice %3 {offsets = [32, 0], sizes = [32, 32], strides = [1, 1]} : vector<160x96xbf16> to vector<32x32xbf16>
    %8 = vector.extract_strided_slice %3 {offsets = [64, 0], sizes = [32, 64], strides = [1, 1]} : vector<160x96xbf16> to vector<32x64xbf16>
    %9 = vector.extract_strided_slice %3 {offsets = [96, 0], sizes = [64, 32], strides = [1, 1]} : vector<160x96xbf16> to vector<64x32xbf16>
    %10 = vector.extract_strided_slice %5 {offsets = [0, 0], sizes = [1, 96], strides = [1, 1]} : vector<8x96xf32> to vector<1x96xf32>
    %11 = vector.extract_strided_slice %5 {offsets = [1, 0], sizes = [1, 64], strides = [1, 1]} : vector<8x96xf32> to vector<1x64xf32>
    %12 = vector.extract_strided_slice %5 {offsets = [2, 0], sizes = [1, 32], strides = [1, 1]} : vector<8x96xf32> to vector<1x32xf32>
    %13 = vector.extract_strided_slice %5 {offsets = [3, 0], sizes = [1, 32], strides = [1, 1]} : vector<8x96xf32> to vector<1x32xf32>
    %14 = vector.extract_strided_slice %5 {offsets = [4, 0], sizes = [1, 32], strides = [1, 1]} : vector<8x96xf32> to vector<1x32xf32>
    %15 = vector.extract_strided_slice %5 {offsets = [5, 0], sizes = [1, 32], strides = [1, 1]} : vector<8x96xf32> to vector<1x32xf32>
    %16 = vector.extract_strided_slice %5 {offsets = [6, 0], sizes = [1, 32], strides = [1, 1]} : vector<8x96xf32> to vector<1x32xf32>
    %17 = vector.extract_strided_slice %5 {offsets = [7, 0], sizes = [1, 32], strides = [1, 1]} : vector<8x96xf32> to vector<1x32xf32>
    %18 = arith.truncf %1 : vector<16x32xf32> to vector<16x32xbf16>
    %cst = arith.constant dense<0.000000e+00> : vector<16x96xf32>
    %19 = tpu.matmul %18, %6, %cst {dimension_numbers = #tpu.dot_dimension_numbers<[1], [0], [0], [1], [0, 0, 1, 1], [], []>} : vector<16x32xbf16>, vector<32x96xbf16>, vector<16x96xf32> -> vector<16x96xf32>
    %20 = vector.broadcast %10 : vector<1x96xf32> to vector<16x96xf32>
    %21 = arith.addf %19, %20 : vector<16x96xf32>
    %22 = vector.extract_strided_slice %21 {offsets = [0, 0], sizes = [16, 8], strides = [1, 1]} : vector<16x96xf32> to vector<16x8xf32>
    %23 = vector.extract_strided_slice %21 {offsets = [0, 8], sizes = [16, 8], strides = [1, 1]} : vector<16x96xf32> to vector<16x8xf32>
    %24 = vector.extract_strided_slice %21 {offsets = [0, 16], sizes = [16, 8], strides = [1, 1]} : vector<16x96xf32> to vector<16x8xf32>
    %25 = vector.extract_strided_slice %21 {offsets = [0, 24], sizes = [16, 8], strides = [1, 1]} : vector<16x96xf32> to vector<16x8xf32>
    %26 = vector.shape_cast %22 : vector<16x8xf32> to vector<1x16x8xf32>
    %27 = vector.shape_cast %23 : vector<16x8xf32> to vector<1x16x8xf32>
    %28 = vector.shape_cast %24 : vector<16x8xf32> to vector<1x16x8xf32>
    %29 = vector.shape_cast %25 : vector<16x8xf32> to vector<1x16x8xf32>
    %30 = tpu.concatenate %26, %27, %28, %29 in 0 : vector<1x16x8xf32>, vector<1x16x8xf32>, vector<1x16x8xf32>, vector<1x16x8xf32> -> vector<4x16x8xf32>
    %31 = vector.shape_cast %30 : vector<4x16x8xf32> to vector<8x8x8xf32>
    %32 = arith.truncf %31 : vector<8x8x8xf32> to vector<8x8x8xbf16>
    %33 = vector.extract_strided_slice %21 {offsets = [0, 32], sizes = [16, 8], strides = [1, 1]} : vector<16x96xf32> to vector<16x8xf32>
    %34 = vector.extract_strided_slice %21 {offsets = [0, 40], sizes = [16, 8], strides = [1, 1]} : vector<16x96xf32> to vector<16x8xf32>
    %35 = vector.extract_strided_slice %21 {offsets = [0, 48], sizes = [16, 8], strides = [1, 1]} : vector<16x96xf32> to vector<16x8xf32>
    %36 = vector.extract_strided_slice %21 {offsets = [0, 56], sizes = [16, 8], strides = [1, 1]} : vector<16x96xf32> to vector<16x8xf32>
    %37 = vector.shape_cast %33 : vector<16x8xf32> to vector<1x16x8xf32>
    %38 = vector.shape_cast %34 : vector<16x8xf32> to vector<1x16x8xf32>
    %39 = vector.shape_cast %35 : vector<16x8xf32> to vector<1x16x8xf32>
    %40 = vector.shape_cast %36 : vector<16x8xf32> to vector<1x16x8xf32>
    %41 = tpu.concatenate %37, %38, %39, %40 in 0 : vector<1x16x8xf32>, vector<1x16x8xf32>, vector<1x16x8xf32>, vector<1x16x8xf32> -> vector<4x16x8xf32>
    %42 = vector.shape_cast %41 : vector<4x16x8xf32> to vector<8x8x8xf32>
    %43 = arith.truncf %42 : vector<8x8x8xf32> to vector<8x8x8xbf16>
    %44 = vector.extract_strided_slice %21 {offsets = [0, 64], sizes = [16, 8], strides = [1, 1]} : vector<16x96xf32> to vector<16x8xf32>
    %45 = vector.extract_strided_slice %21 {offsets = [0, 72], sizes = [16, 8], strides = [1, 1]} : vector<16x96xf32> to vector<16x8xf32>
    %46 = vector.extract_strided_slice %21 {offsets = [0, 80], sizes = [16, 8], strides = [1, 1]} : vector<16x96xf32> to vector<16x8xf32>
    %47 = vector.extract_strided_slice %21 {offsets = [0, 88], sizes = [16, 8], strides = [1, 1]} : vector<16x96xf32> to vector<16x8xf32>
    %48 = vector.shape_cast %44 : vector<16x8xf32> to vector<1x16x8xf32>
    %49 = vector.shape_cast %45 : vector<16x8xf32> to vector<1x16x8xf32>
    %50 = vector.shape_cast %46 : vector<16x8xf32> to vector<1x16x8xf32>
    %51 = vector.shape_cast %47 : vector<16x8xf32> to vector<1x16x8xf32>
    %52 = tpu.concatenate %48, %49, %50, %51 in 0 : vector<1x16x8xf32>, vector<1x16x8xf32>, vector<1x16x8xf32>, vector<1x16x8xf32> -> vector<4x16x8xf32>
    %53 = vector.shape_cast %52 : vector<4x16x8xf32> to vector<8x8x8xf32>
    %54 = arith.truncf %53 : vector<8x8x8xf32> to vector<8x8x8xbf16>
    "tpu.trace_start"() <{level = 10 : i32, message = "gqd,gkd->gqk"}> : () -> ()
    %cst_8 = arith.constant dense<0.000000e+00> : vector<8x8x8xf32>
    %55 = tpu.matmul %32, %43, %cst_8 {dimension_numbers = #tpu.dot_dimension_numbers<[2], [2], [1], [1], [0, 0, 0, 1, 1, 1], [0], [0]>} : vector<8x8x8xbf16>, vector<8x8x8xbf16>, vector<8x8x8xf32> -> vector<8x8x8xf32>
    "tpu.trace_stop"() : () -> ()
    %cst_9 = arith.constant 0.353553385 : f32
    %56 = vector.broadcast %cst_9 : f32 to vector<8x8x8xf32>
    %57 = arith.mulf %55, %56 : vector<8x8x8xf32>
    %c0_10 = arith.constant 0 : index
    %c0_11 = arith.constant 0 : index
    %c0_12 = arith.constant 0 : index
    %c0_13 = arith.constant 0 : index
    %58 = vector.load %arg1[%c0_10, %c0_11, %c0_12, %c0_13] : memref<2x8x8x8xf32, #tpu.memory_space<vmem>>, vector<1x8x8x8xf32>
    %59 = vector.shape_cast %58 : vector<1x8x8x8xf32> to vector<8x8x8xf32>
    %60 = arith.addf %57, %59 : vector<8x8x8xf32>
    %cst_14 = arith.constant dense<0xFF800000> : vector<8x8xf32>
    %61 = vector.multi_reduction <maximumf>, %60, %cst_14 [2] : vector<8x8x8xf32> to vector<8x8xf32>
    %62 = vector.shape_cast %61 : vector<8x8xf32> to vector<8x8x1xf32>
    %63 = vector.broadcast %62 : vector<8x8x1xf32> to vector<8x8x8xf32>
    %64 = arith.subf %60, %63 : vector<8x8x8xf32>
    %65 = math.exp %64 : vector<8x8x8xf32>
    %cst_15 = arith.constant dense<0.000000e+00> : vector<8x8xf32>
    %66 = vector.multi_reduction <add>, %65, %cst_15 [2] : vector<8x8x8xf32> to vector<8x8xf32>
    %67 = vector.shape_cast %66 : vector<8x8xf32> to vector<8x8x1xf32>
    %68 = tpu.reciprocal %67 {approx = true} : vector<8x8x1xf32> -> vector<8x8x1xf32>
    %69 = vector.broadcast %68 : vector<8x8x1xf32> to vector<8x8x8xf32>
    %70 = arith.mulf %65, %69 : vector<8x8x8xf32>
    %71 = arith.truncf %70 : vector<8x8x8xf32> to vector<8x8x8xbf16>
    "tpu.trace_start"() <{level = 10 : i32, message = "gqk,gkd->gqd"}> : () -> ()
    %cst_16 = arith.constant dense<0.000000e+00> : vector<8x8x8xf32>
    %72 = tpu.matmul %71, %54, %cst_16 {dimension_numbers = #tpu.dot_dimension_numbers<[2], [1], [1], [2], [0, 0, 0, 1, 1, 2], [0], [0]>} : vector<8x8x8xbf16>, vector<8x8x8xbf16>, vector<8x8x8xf32> -> vector<8x8x8xf32>
    "tpu.trace_stop"() : () -> ()
    %73 = vector.shape_cast %72 : vector<8x8x8xf32> to vector<4x16x8xf32>
    %74 = vector.extract_strided_slice %73 {offsets = [0, 0, 0], sizes = [1, 16, 8], strides = [1, 1, 1]} : vector<4x16x8xf32> to vector<1x16x8xf32>
    %75 = vector.shape_cast %74 : vector<1x16x8xf32> to vector<16x8xf32>
    %76 = vector.extract_strided_slice %73 {offsets = [1, 0, 0], sizes = [1, 16, 8], strides = [1, 1, 1]} : vector<4x16x8xf32> to vector<1x16x8xf32>
    %77 = vector.shape_cast %76 : vector<1x16x8xf32> to vector<16x8xf32>
    %78 = vector.extract_strided_slice %73 {offsets = [2, 0, 0], sizes = [1, 16, 8], strides = [1, 1, 1]} : vector<4x16x8xf32> to vector<1x16x8xf32>
    %79 = vector.shape_cast %78 : vector<1x16x8xf32> to vector<16x8xf32>
    %80 = vector.extract_strided_slice %73 {offsets = [3, 0, 0], sizes = [1, 16, 8], strides = [1, 1, 1]} : vector<4x16x8xf32> to vector<1x16x8xf32>
    %81 = vector.shape_cast %80 : vector<1x16x8xf32> to vector<16x8xf32>
    %82 = tpu.concatenate %75, %77, %79, %81 in 1 : vector<16x8xf32>, vector<16x8xf32>, vector<16x8xf32>, vector<16x8xf32> -> vector<16x32xf32>
    %83 = arith.truncf %82 : vector<16x32xf32> to vector<16x32xbf16>
    %cst_17 = arith.constant dense<0.000000e+00> : vector<16x32xf32>
    %84 = tpu.matmul %83, %7, %cst_17 {dimension_numbers = #tpu.dot_dimension_numbers<[1], [0], [0], [1], [0, 0, 1, 1], [], []>} : vector<16x32xbf16>, vector<32x32xbf16>, vector<16x32xf32> -> vector<16x32xf32>
    %85 = vector.broadcast %12 : vector<1x32xf32> to vector<16x32xf32>
    %86 = arith.addf %84, %85 : vector<16x32xf32>
    %87 = arith.addf %1, %86 : vector<16x32xf32>
    %cst_18 = arith.constant dense<0.000000e+00> : vector<16xf32>
    %88 = vector.multi_reduction <add>, %87, %cst_18 [1] : vector<16x32xf32> to vector<16xf32>
    %89 = vector.shape_cast %88 : vector<16xf32> to vector<16x1xf32>
    %cst_19 = arith.constant 3.200000e+01 : f32
    %90 = vector.broadcast %cst_19 : f32 to vector<16x1xf32>
    %91 = arith.divf %89, %90 : vector<16x1xf32>
    %92 = arith.mulf %87, %87 : vector<16x32xf32>
    %cst_20 = arith.constant dense<0.000000e+00> : vector<16xf32>
    %93 = vector.multi_reduction <add>, %92, %cst_20 [1] : vector<16x32xf32> to vector<16xf32>
    %94 = vector.shape_cast %93 : vector<16xf32> to vector<16x1xf32>
    %cst_21 = arith.constant 3.200000e+01 : f32
    %95 = vector.broadcast %cst_21 : f32 to vector<16x1xf32>
    %96 = arith.divf %94, %95 : vector<16x1xf32>
    %97 = arith.mulf %91, %91 : vector<16x1xf32>
    %98 = arith.subf %96, %97 : vector<16x1xf32>
    %99 = vector.broadcast %91 : vector<16x1xf32> to vector<16x32xf32>
    %100 = arith.subf %87, %99 : vector<16x32xf32>
    %cst_22 = arith.constant 9.99999974E-6 : f32
    %101 = vector.broadcast %cst_22 : f32 to vector<16x1xf32>
    %102 = arith.addf %98, %101 : vector<16x1xf32>
    %103 = math.rsqrt %102 : vector<16x1xf32>
    %104 = vector.broadcast %103 : vector<16x1xf32> to vector<16x32xf32>
    %105 = arith.mulf %100, %104 : vector<16x32xf32>
    %106 = vector.broadcast %14 : vector<1x32xf32> to vector<16x32xf32>
    %107 = arith.mulf %105, %106 : vector<16x32xf32>
    %108 = vector.broadcast %15 : vector<1x32xf32> to vector<16x32xf32>
    %109 = arith.addf %107, %108 : vector<16x32xf32>
    %110 = arith.truncf %109 : vector<16x32xf32> to vector<16x32xbf16>
    %cst_23 = arith.constant dense<0.000000e+00> : vector<16x64xf32>
    %111 = tpu.matmul %110, %8, %cst_23 {dimension_numbers = #tpu.dot_dimension_numbers<[1], [0], [0], [1], [0, 0, 1, 1], [], []>} : vector<16x32xbf16>, vector<32x64xbf16>, vector<16x64xf32> -> vector<16x64xf32>
    %112 = vector.broadcast %11 : vector<1x64xf32> to vector<16x64xf32>
    %113 = arith.addf %111, %112 : vector<16x64xf32>
    %cst_24 = arith.constant 0.000000e+00 : f32
    %114 = vector.broadcast %cst_24 : f32 to vector<16x64xf32>
    %115 = arith.maximumf %113, %114 : vector<16x64xf32>
    %116 = arith.truncf %115 : vector<16x64xf32> to vector<16x64xbf16>
    %cst_25 = arith.constant dense<0.000000e+00> : vector<16x32xf32>
    %117 = tpu.matmul %116, %9, %cst_25 {dimension_numbers = #tpu.dot_dimension_numbers<[1], [0], [0], [1], [0, 0, 1, 1], [], []>} : vector<16x64xbf16>, vector<64x32xbf16>, vector<16x32xf32> -> vector<16x32xf32>
    %118 = vector.broadcast %13 : vector<1x32xf32> to vector<16x32xf32>
    %119 = arith.addf %117, %118 : vector<16x32xf32>
    %120 = arith.addf %109, %119 : vector<16x32xf32>
    %cst_26 = arith.constant dense<0.000000e+00> : vector<16xf32>
    %121 = vector.multi_reduction <add>, %120, %cst_26 [1] : vector<16x32xf32> to vector<16xf32>
    %122 = vector.shape_cast %121 : vector<16xf32> to vector<16x1xf32>
    %cst_27 = arith.constant 3.200000e+01 : f32
    %123 = vector.broadcast %cst_27 : f32 to vector<16x1xf32>
    %124 = arith.divf %122, %123 : vector<16x1xf32>
    %125 = arith.mulf %120, %120 : vector<16x32xf32>
    %cst_28 = arith.constant dense<0.000000e+00> : vector<16xf32>
    %126 = vector.multi_reduction <add>, %125, %cst_28 [1] : vector<16x32xf32> to vector<16xf32>
    %127 = vector.shape_cast %126 : vector<16xf32> to vector<16x1xf32>
    %cst_29 = arith.constant 3.200000e+01 : f32
    %128 = vector.broadcast %cst_29 : f32 to vector<16x1xf32>
    %129 = arith.divf %127, %128 : vector<16x1xf32>
    %130 = arith.mulf %124, %124 : vector<16x1xf32>
    %131 = arith.subf %129, %130 : vector<16x1xf32>
    %132 = vector.broadcast %124 : vector<16x1xf32> to vector<16x32xf32>
    %133 = arith.subf %120, %132 : vector<16x32xf32>
    %cst_30 = arith.constant 9.99999974E-6 : f32
    %134 = vector.broadcast %cst_30 : f32 to vector<16x1xf32>
    %135 = arith.addf %131, %134 : vector<16x1xf32>
    %136 = math.rsqrt %135 : vector<16x1xf32>
    %137 = vector.broadcast %136 : vector<16x1xf32> to vector<16x32xf32>
    %138 = arith.mulf %133, %137 : vector<16x32xf32>
    %139 = vector.broadcast %16 : vector<1x32xf32> to vector<16x32xf32>
    %140 = arith.mulf %138, %139 : vector<16x32xf32>
    %141 = vector.broadcast %17 : vector<1x32xf32> to vector<16x32xf32>
    %142 = arith.addf %140, %141 : vector<16x32xf32>
    %c1 = arith.constant 1 : index
    %c0_31 = arith.constant 0 : index
    %c0_32 = arith.constant 0 : index
    %143 = vector.load %arg2[%c1, %c0_31, %c0_32] : memref<2x160x96xbf16, #tpu.memory_space<vmem>>, vector<1x160x96xbf16>
    %144 = vector.shape_cast %143 : vector<1x160x96xbf16> to vector<160x96xbf16>
    %c1_33 = arith.constant 1 : index
    %c0_34 = arith.constant 0 : index
    %c0_35 = arith.constant 0 : index
    %145 = vector.load %arg3[%c1_33, %c0_34, %c0_35] : memref<2x8x96xf32, #tpu.memory_space<vmem>>, vector<1x8x96xf32>
    %146 = vector.shape_cast %145 : vector<1x8x96xf32> to vector<8x96xf32>
    %147 = vector.extract_strided_slice %144 {offsets = [0, 0], sizes = [32, 96], strides = [1, 1]} : vector<160x96xbf16> to vector<32x96xbf16>
    %148 = vector.extract_strided_slice %144 {offsets = [32, 0], sizes = [32, 32], strides = [1, 1]} : vector<160x96xbf16> to vector<32x32xbf16>
    %149 = vector.extract_strided_slice %144 {offsets = [64, 0], sizes = [32, 64], strides = [1, 1]} : vector<160x96xbf16> to vector<32x64xbf16>
    %150 = vector.extract_strided_slice %144 {offsets = [96, 0], sizes = [64, 32], strides = [1, 1]} : vector<160x96xbf16> to vector<64x32xbf16>
    %151 = vector.extract_strided_slice %146 {offsets = [0, 0], sizes = [1, 96], strides = [1, 1]} : vector<8x96xf32> to vector<1x96xf32>
    %152 = vector.extract_strided_slice %146 {offsets = [1, 0], sizes = [1, 64], strides = [1, 1]} : vector<8x96xf32> to vector<1x64xf32>
    %153 = vector.extract_strided_slice %146 {offsets = [2, 0], sizes = [1, 32], strides = [1, 1]} : vector<8x96xf32> to vector<1x32xf32>
    %154 = vector.extract_strided_slice %146 {offsets = [3, 0], sizes = [1, 32], strides = [1, 1]} : vector<8x96xf32> to vector<1x32xf32>
    %155 = vector.extract_strided_slice %146 {offsets = [4, 0], sizes = [1, 32], strides = [1, 1]} : vector<8x96xf32> to vector<1x32xf32>
    %156 = vector.extract_strided_slice %146 {offsets = [5, 0], sizes = [1, 32], strides = [1, 1]} : vector<8x96xf32> to vector<1x32xf32>
    %157 = vector.extract_strided_slice %146 {offsets = [6, 0], sizes = [1, 32], strides = [1, 1]} : vector<8x96xf32> to vector<1x32xf32>
    %158 = vector.extract_strided_slice %146 {offsets = [7, 0], sizes = [1, 32], strides = [1, 1]} : vector<8x96xf32> to vector<1x32xf32>
    %159 = arith.truncf %142 : vector<16x32xf32> to vector<16x32xbf16>
    %cst_36 = arith.constant dense<0.000000e+00> : vector<16x96xf32>
    %160 = tpu.matmul %159, %147, %cst_36 {dimension_numbers = #tpu.dot_dimension_numbers<[1], [0], [0], [1], [0, 0, 1, 1], [], []>} : vector<16x32xbf16>, vector<32x96xbf16>, vector<16x96xf32> -> vector<16x96xf32>
    %161 = vector.broadcast %151 : vector<1x96xf32> to vector<16x96xf32>
    %162 = arith.addf %160, %161 : vector<16x96xf32>
    %163 = vector.extract_strided_slice %162 {offsets = [0, 0], sizes = [16, 8], strides = [1, 1]} : vector<16x96xf32> to vector<16x8xf32>
    %164 = vector.extract_strided_slice %162 {offsets = [0, 8], sizes = [16, 8], strides = [1, 1]} : vector<16x96xf32> to vector<16x8xf32>
    %165 = vector.extract_strided_slice %162 {offsets = [0, 16], sizes = [16, 8], strides = [1, 1]} : vector<16x96xf32> to vector<16x8xf32>
    %166 = vector.extract_strided_slice %162 {offsets = [0, 24], sizes = [16, 8], strides = [1, 1]} : vector<16x96xf32> to vector<16x8xf32>
    %167 = vector.shape_cast %163 : vector<16x8xf32> to vector<1x16x8xf32>
    %168 = vector.shape_cast %164 : vector<16x8xf32> to vector<1x16x8xf32>
    %169 = vector.shape_cast %165 : vector<16x8xf32> to vector<1x16x8xf32>
    %170 = vector.shape_cast %166 : vector<16x8xf32> to vector<1x16x8xf32>
    %171 = tpu.concatenate %167, %168, %169, %170 in 0 : vector<1x16x8xf32>, vector<1x16x8xf32>, vector<1x16x8xf32>, vector<1x16x8xf32> -> vector<4x16x8xf32>
    %172 = vector.shape_cast %171 : vector<4x16x8xf32> to vector<8x8x8xf32>
    %173 = arith.truncf %172 : vector<8x8x8xf32> to vector<8x8x8xbf16>
    %174 = vector.extract_strided_slice %162 {offsets = [0, 32], sizes = [16, 8], strides = [1, 1]} : vector<16x96xf32> to vector<16x8xf32>
    %175 = vector.extract_strided_slice %162 {offsets = [0, 40], sizes = [16, 8], strides = [1, 1]} : vector<16x96xf32> to vector<16x8xf32>
    %176 = vector.extract_strided_slice %162 {offsets = [0, 48], sizes = [16, 8], strides = [1, 1]} : vector<16x96xf32> to vector<16x8xf32>
    %177 = vector.extract_strided_slice %162 {offsets = [0, 56], sizes = [16, 8], strides = [1, 1]} : vector<16x96xf32> to vector<16x8xf32>
    %178 = vector.shape_cast %174 : vector<16x8xf32> to vector<1x16x8xf32>
    %179 = vector.shape_cast %175 : vector<16x8xf32> to vector<1x16x8xf32>
    %180 = vector.shape_cast %176 : vector<16x8xf32> to vector<1x16x8xf32>
    %181 = vector.shape_cast %177 : vector<16x8xf32> to vector<1x16x8xf32>
    %182 = tpu.concatenate %178, %179, %180, %181 in 0 : vector<1x16x8xf32>, vector<1x16x8xf32>, vector<1x16x8xf32>, vector<1x16x8xf32> -> vector<4x16x8xf32>
    %183 = vector.shape_cast %182 : vector<4x16x8xf32> to vector<8x8x8xf32>
    %184 = arith.truncf %183 : vector<8x8x8xf32> to vector<8x8x8xbf16>
    %185 = vector.extract_strided_slice %162 {offsets = [0, 64], sizes = [16, 8], strides = [1, 1]} : vector<16x96xf32> to vector<16x8xf32>
    %186 = vector.extract_strided_slice %162 {offsets = [0, 72], sizes = [16, 8], strides = [1, 1]} : vector<16x96xf32> to vector<16x8xf32>
    %187 = vector.extract_strided_slice %162 {offsets = [0, 80], sizes = [16, 8], strides = [1, 1]} : vector<16x96xf32> to vector<16x8xf32>
    %188 = vector.extract_strided_slice %162 {offsets = [0, 88], sizes = [16, 8], strides = [1, 1]} : vector<16x96xf32> to vector<16x8xf32>
    %189 = vector.shape_cast %185 : vector<16x8xf32> to vector<1x16x8xf32>
    %190 = vector.shape_cast %186 : vector<16x8xf32> to vector<1x16x8xf32>
    %191 = vector.shape_cast %187 : vector<16x8xf32> to vector<1x16x8xf32>
    %192 = vector.shape_cast %188 : vector<16x8xf32> to vector<1x16x8xf32>
    %193 = tpu.concatenate %189, %190, %191, %192 in 0 : vector<1x16x8xf32>, vector<1x16x8xf32>, vector<1x16x8xf32>, vector<1x16x8xf32> -> vector<4x16x8xf32>
    %194 = vector.shape_cast %193 : vector<4x16x8xf32> to vector<8x8x8xf32>
    %195 = arith.truncf %194 : vector<8x8x8xf32> to vector<8x8x8xbf16>
    "tpu.trace_start"() <{level = 10 : i32, message = "gqd,gkd->gqk"}> : () -> ()
    %cst_37 = arith.constant dense<0.000000e+00> : vector<8x8x8xf32>
    %196 = tpu.matmul %173, %184, %cst_37 {dimension_numbers = #tpu.dot_dimension_numbers<[2], [2], [1], [1], [0, 0, 0, 1, 1, 1], [0], [0]>} : vector<8x8x8xbf16>, vector<8x8x8xbf16>, vector<8x8x8xf32> -> vector<8x8x8xf32>
    "tpu.trace_stop"() : () -> ()
    %cst_38 = arith.constant 0.353553385 : f32
    %197 = vector.broadcast %cst_38 : f32 to vector<8x8x8xf32>
    %198 = arith.mulf %196, %197 : vector<8x8x8xf32>
    %c1_39 = arith.constant 1 : index
    %c0_40 = arith.constant 0 : index
    %c0_41 = arith.constant 0 : index
    %c0_42 = arith.constant 0 : index
    %199 = vector.load %arg1[%c1_39, %c0_40, %c0_41, %c0_42] : memref<2x8x8x8xf32, #tpu.memory_space<vmem>>, vector<1x8x8x8xf32>
    %200 = vector.shape_cast %199 : vector<1x8x8x8xf32> to vector<8x8x8xf32>
    %201 = arith.addf %198, %200 : vector<8x8x8xf32>
    %cst_43 = arith.constant dense<0xFF800000> : vector<8x8xf32>
    %202 = vector.multi_reduction <maximumf>, %201, %cst_43 [2] : vector<8x8x8xf32> to vector<8x8xf32>
    %203 = vector.shape_cast %202 : vector<8x8xf32> to vector<8x8x1xf32>
    %204 = vector.broadcast %203 : vector<8x8x1xf32> to vector<8x8x8xf32>
    %205 = arith.subf %201, %204 : vector<8x8x8xf32>
    %206 = math.exp %205 : vector<8x8x8xf32>
    %cst_44 = arith.constant dense<0.000000e+00> : vector<8x8xf32>
    %207 = vector.multi_reduction <add>, %206, %cst_44 [2] : vector<8x8x8xf32> to vector<8x8xf32>
    %208 = vector.shape_cast %207 : vector<8x8xf32> to vector<8x8x1xf32>
    %209 = tpu.reciprocal %208 {approx = true} : vector<8x8x1xf32> -> vector<8x8x1xf32>
    %210 = vector.broadcast %209 : vector<8x8x1xf32> to vector<8x8x8xf32>
    %211 = arith.mulf %206, %210 : vector<8x8x8xf32>
    %212 = arith.truncf %211 : vector<8x8x8xf32> to vector<8x8x8xbf16>
    "tpu.trace_start"() <{level = 10 : i32, message = "gqk,gkd->gqd"}> : () -> ()
    %cst_45 = arith.constant dense<0.000000e+00> : vector<8x8x8xf32>
    %213 = tpu.matmul %212, %195, %cst_45 {dimension_numbers = #tpu.dot_dimension_numbers<[2], [1], [1], [2], [0, 0, 0, 1, 1, 2], [0], [0]>} : vector<8x8x8xbf16>, vector<8x8x8xbf16>, vector<8x8x8xf32> -> vector<8x8x8xf32>
    "tpu.trace_stop"() : () -> ()
    %214 = vector.shape_cast %213 : vector<8x8x8xf32> to vector<4x16x8xf32>
    %215 = vector.extract_strided_slice %214 {offsets = [0, 0, 0], sizes = [1, 16, 8], strides = [1, 1, 1]} : vector<4x16x8xf32> to vector<1x16x8xf32>
    %216 = vector.shape_cast %215 : vector<1x16x8xf32> to vector<16x8xf32>
    %217 = vector.extract_strided_slice %214 {offsets = [1, 0, 0], sizes = [1, 16, 8], strides = [1, 1, 1]} : vector<4x16x8xf32> to vector<1x16x8xf32>
    %218 = vector.shape_cast %217 : vector<1x16x8xf32> to vector<16x8xf32>
    %219 = vector.extract_strided_slice %214 {offsets = [2, 0, 0], sizes = [1, 16, 8], strides = [1, 1, 1]} : vector<4x16x8xf32> to vector<1x16x8xf32>
    %220 = vector.shape_cast %219 : vector<1x16x8xf32> to vector<16x8xf32>
    %221 = vector.extract_strided_slice %214 {offsets = [3, 0, 0], sizes = [1, 16, 8], strides = [1, 1, 1]} : vector<4x16x8xf32> to vector<1x16x8xf32>
    %222 = vector.shape_cast %221 : vector<1x16x8xf32> to vector<16x8xf32>
    %223 = tpu.concatenate %216, %218, %220, %222 in 1 : vector<16x8xf32>, vector<16x8xf32>, vector<16x8xf32>, vector<16x8xf32> -> vector<16x32xf32>
    %224 = arith.truncf %223 : vector<16x32xf32> to vector<16x32xbf16>
    %cst_46 = arith.constant dense<0.000000e+00> : vector<16x32xf32>
    %225 = tpu.matmul %224, %148, %cst_46 {dimension_numbers = #tpu.dot_dimension_numbers<[1], [0], [0], [1], [0, 0, 1, 1], [], []>} : vector<16x32xbf16>, vector<32x32xbf16>, vector<16x32xf32> -> vector<16x32xf32>
    %226 = vector.broadcast %153 : vector<1x32xf32> to vector<16x32xf32>
    %227 = arith.addf %225, %226 : vector<16x32xf32>
    %228 = arith.addf %142, %227 : vector<16x32xf32>
    %cst_47 = arith.constant dense<0.000000e+00> : vector<16xf32>
    %229 = vector.multi_reduction <add>, %228, %cst_47 [1] : vector<16x32xf32> to vector<16xf32>
    %230 = vector.shape_cast %229 : vector<16xf32> to vector<16x1xf32>
    %cst_48 = arith.constant 3.200000e+01 : f32
    %231 = vector.broadcast %cst_48 : f32 to vector<16x1xf32>
    %232 = arith.divf %230, %231 : vector<16x1xf32>
    %233 = arith.mulf %228, %228 : vector<16x32xf32>
    %cst_49 = arith.constant dense<0.000000e+00> : vector<16xf32>
    %234 = vector.multi_reduction <add>, %233, %cst_49 [1] : vector<16x32xf32> to vector<16xf32>
    %235 = vector.shape_cast %234 : vector<16xf32> to vector<16x1xf32>
    %cst_50 = arith.constant 3.200000e+01 : f32
    %236 = vector.broadcast %cst_50 : f32 to vector<16x1xf32>
    %237 = arith.divf %235, %236 : vector<16x1xf32>
    %238 = arith.mulf %232, %232 : vector<16x1xf32>
    %239 = arith.subf %237, %238 : vector<16x1xf32>
    %240 = vector.broadcast %232 : vector<16x1xf32> to vector<16x32xf32>
    %241 = arith.subf %228, %240 : vector<16x32xf32>
    %cst_51 = arith.constant 9.99999974E-6 : f32
    %242 = vector.broadcast %cst_51 : f32 to vector<16x1xf32>
    %243 = arith.addf %239, %242 : vector<16x1xf32>
    %244 = math.rsqrt %243 : vector<16x1xf32>
    %245 = vector.broadcast %244 : vector<16x1xf32> to vector<16x32xf32>
    %246 = arith.mulf %241, %245 : vector<16x32xf32>
    %247 = vector.broadcast %155 : vector<1x32xf32> to vector<16x32xf32>
    %248 = arith.mulf %246, %247 : vector<16x32xf32>
    %249 = vector.broadcast %156 : vector<1x32xf32> to vector<16x32xf32>
    %250 = arith.addf %248, %249 : vector<16x32xf32>
    %251 = arith.truncf %250 : vector<16x32xf32> to vector<16x32xbf16>
    %cst_52 = arith.constant dense<0.000000e+00> : vector<16x64xf32>
    %252 = tpu.matmul %251, %149, %cst_52 {dimension_numbers = #tpu.dot_dimension_numbers<[1], [0], [0], [1], [0, 0, 1, 1], [], []>} : vector<16x32xbf16>, vector<32x64xbf16>, vector<16x64xf32> -> vector<16x64xf32>
    %253 = vector.broadcast %152 : vector<1x64xf32> to vector<16x64xf32>
    %254 = arith.addf %252, %253 : vector<16x64xf32>
    %cst_53 = arith.constant 0.000000e+00 : f32
    %255 = vector.broadcast %cst_53 : f32 to vector<16x64xf32>
    %256 = arith.maximumf %254, %255 : vector<16x64xf32>
    %257 = arith.truncf %256 : vector<16x64xf32> to vector<16x64xbf16>
    %cst_54 = arith.constant dense<0.000000e+00> : vector<16x32xf32>
    %258 = tpu.matmul %257, %150, %cst_54 {dimension_numbers = #tpu.dot_dimension_numbers<[1], [0], [0], [1], [0, 0, 1, 1], [], []>} : vector<16x64xbf16>, vector<64x32xbf16>, vector<16x32xf32> -> vector<16x32xf32>
    %259 = vector.broadcast %154 : vector<1x32xf32> to vector<16x32xf32>
    %260 = arith.addf %258, %259 : vector<16x32xf32>
    %261 = arith.addf %250, %260 : vector<16x32xf32>
    %cst_55 = arith.constant dense<0.000000e+00> : vector<16xf32>
    %262 = vector.multi_reduction <add>, %261, %cst_55 [1] : vector<16x32xf32> to vector<16xf32>
    %263 = vector.shape_cast %262 : vector<16xf32> to vector<16x1xf32>
    %cst_56 = arith.constant 3.200000e+01 : f32
    %264 = vector.broadcast %cst_56 : f32 to vector<16x1xf32>
    %265 = arith.divf %263, %264 : vector<16x1xf32>
    %266 = arith.mulf %261, %261 : vector<16x32xf32>
    %cst_57 = arith.constant dense<0.000000e+00> : vector<16xf32>
    %267 = vector.multi_reduction <add>, %266, %cst_57 [1] : vector<16x32xf32> to vector<16xf32>
    %268 = vector.shape_cast %267 : vector<16xf32> to vector<16x1xf32>
    %cst_58 = arith.constant 3.200000e+01 : f32
    %269 = vector.broadcast %cst_58 : f32 to vector<16x1xf32>
    %270 = arith.divf %268, %269 : vector<16x1xf32>
    %271 = arith.mulf %265, %265 : vector<16x1xf32>
    %272 = arith.subf %270, %271 : vector<16x1xf32>
    %273 = vector.broadcast %265 : vector<16x1xf32> to vector<16x32xf32>
    %274 = arith.subf %261, %273 : vector<16x32xf32>
    %cst_59 = arith.constant 9.99999974E-6 : f32
    %275 = vector.broadcast %cst_59 : f32 to vector<16x1xf32>
    %276 = arith.addf %272, %275 : vector<16x1xf32>
    %277 = math.rsqrt %276 : vector<16x1xf32>
    %278 = vector.broadcast %277 : vector<16x1xf32> to vector<16x32xf32>
    %279 = arith.mulf %274, %278 : vector<16x32xf32>
    %280 = vector.broadcast %157 : vector<1x32xf32> to vector<16x32xf32>
    %281 = arith.mulf %279, %280 : vector<16x32xf32>
    %282 = vector.broadcast %158 : vector<1x32xf32> to vector<16x32xf32>
    %283 = arith.addf %281, %282 : vector<16x32xf32>
    %c0_60 = arith.constant 0 : index
    %c0_61 = arith.constant 0 : index
    %284 = vector.load %arg4[%c0_60, %c0_61] : memref<2x32xf32, #tpu.memory_space<vmem>>, vector<1x32xf32>
    %c1_62 = arith.constant 1 : index
    %c0_63 = arith.constant 0 : index
    %285 = vector.load %arg4[%c1_62, %c0_63] : memref<2x32xf32, #tpu.memory_space<vmem>>, vector<1x32xf32>
    %cst_64 = arith.constant dense<0.000000e+00> : vector<16xf32>
    %286 = vector.multi_reduction <add>, %283, %cst_64 [1] : vector<16x32xf32> to vector<16xf32>
    %287 = vector.shape_cast %286 : vector<16xf32> to vector<16x1xf32>
    %cst_65 = arith.constant 3.200000e+01 : f32
    %288 = vector.broadcast %cst_65 : f32 to vector<16x1xf32>
    %289 = arith.divf %287, %288 : vector<16x1xf32>
    %290 = arith.mulf %283, %283 : vector<16x32xf32>
    %cst_66 = arith.constant dense<0.000000e+00> : vector<16xf32>
    %291 = vector.multi_reduction <add>, %290, %cst_66 [1] : vector<16x32xf32> to vector<16xf32>
    %292 = vector.shape_cast %291 : vector<16xf32> to vector<16x1xf32>
    %cst_67 = arith.constant 3.200000e+01 : f32
    %293 = vector.broadcast %cst_67 : f32 to vector<16x1xf32>
    %294 = arith.divf %292, %293 : vector<16x1xf32>
    %295 = arith.mulf %289, %289 : vector<16x1xf32>
    %296 = arith.subf %294, %295 : vector<16x1xf32>
    %297 = vector.broadcast %289 : vector<16x1xf32> to vector<16x32xf32>
    %298 = arith.subf %283, %297 : vector<16x32xf32>
    %cst_68 = arith.constant 9.99999974E-6 : f32
    %299 = vector.broadcast %cst_68 : f32 to vector<16x1xf32>
    %300 = arith.addf %296, %299 : vector<16x1xf32>
    %301 = math.rsqrt %300 : vector<16x1xf32>
    %302 = vector.broadcast %301 : vector<16x1xf32> to vector<16x32xf32>
    %303 = arith.mulf %298, %302 : vector<16x32xf32>
    %304 = vector.broadcast %284 : vector<1x32xf32> to vector<16x32xf32>
    %305 = arith.mulf %303, %304 : vector<16x32xf32>
    %306 = vector.broadcast %285 : vector<1x32xf32> to vector<16x32xf32>
    %307 = arith.addf %305, %306 : vector<16x32xf32>
    %308 = vector.shape_cast %307 : vector<16x32xf32> to vector<2x8x32xf32>
    %c0_69 = arith.constant 0 : index
    %c0_70 = arith.constant 0 : index
    %c0_71 = arith.constant 0 : index
    %309 = vector.load %arg5[%c0_69, %c0_70, %c0_71] : memref<2x8x32xf32, #tpu.memory_space<vmem>>, vector<2x8x32xf32>
    tpu.vector_store %arg5[%c0_69, %c0_70, %c0_71], %308 {strides = array<i32>} : memref<2x8x32xf32, #tpu.memory_space<vmem>>, vector<2x8x32xf32>,
    return
  }
}

</mosaic_0001>

<bundles_post_ra>
// kernel: tpu_custom_call.1
= control target key start
LH: loop header
LB: loop body
LE: loop exit
PB: predicated region body
PF: predicated region fallthrough
CT: control target
= control target key end

     0   :  { %10 = vsyncpa [#allocation3], 0  ;;  %s4186_s0 = inlined_call_operand.hbm [shape: f32[2,8,32], index: 0, kind: input, shape index: {}]   ;;  %s4187_s1 = inlined_call_operand.hbm [shape: f32[2,8,8,8], index: 1, kind: input, shape index: {}]   ;;  %s4188_s2 = inlined_call_operand.hbm [shape: bf16[2,160,96], index: 2, kind: input, shape index: {}]   ;;  %s4189_s3 = inlined_call_operand.hbm [shape: f32[2,8,96], index: 3, kind: input, shape index: {}]   ;;  %s4190_s4 = inlined_call_operand.vmem [shape: f32[2,32], index: 4, kind: input, shape index: {}]   ;;  %s4191_s5 = inlined_call_operand.hbm [shape: f32[2,8,32], index: 5, kind: output, shape index: {}]  }
   0x1   :  { %11 = vsyncpa [#allocation6], 0 }
   0x2   :  { %12 = vsyncpa [#allocation9], 0 }
   0x3   :  { %13 = vsyncpa [#allocation4], 0  ;;  %s3514_s18 = smov [#allocation5]   ;;  %s3515_s20 = smov [#allocation2]  }
   0x4   :  { %s31_s19 = sshll.u32 %s3514_s18, 4  ;;  %s19_s21 = sshll.u32 %s3515_s20, 4  ;;  %s32_s19 = int_to_ptr.vmem [resolvable:$true] %s31_s19  ;;  %s3561_s21 = int_to_ptr.vmem [resolvable:$true] %s19_s21 }
   0x5   :  { %s3396_s24 = scalar_lea.hbm %s4187_s1, 2048 }
   0x6   :  { %p3397_p0 = scmp.ne.s32.totalorder %s4187_s1, %s3396_s24  ;;  %p3400_p1 = scmp.lt.u32.totalorder %s3396_s24, %s4187_s1 }
   0x8   :  { %p3402_p2 = pnand %p3400_p1, %p3397_p0 }
   0xa   :  { %3405 = shalt.err (!%p3402_p2)
}
   0xb   :  { %s3406_s29 = scalar_lea.vmem %s32_s19, 2048  ;;  %p3411_p4 = scmp.lt.s32.totalorder %s32_s19, %s32_s19 }
   0xc   :  { %p3407_p3 = scmp.ne.s32.totalorder %s32_s19, %s3406_s29  ;;  %p3412_p5 = scmp.lt.s32.totalorder %s3406_s29, %s3406_s29 }
   0xe   :  { %p3413_p6 = por %p3412_p5, %p3411_p4 }
  0x10   :  { %p3414_p7 = pnand %p3413_p6, %p3407_p3 }
  0x12   :  { %3417 = shalt.err (!%p3414_p7)
}
  0x13   :  { %s3516_s30 = smov 128   ;;  %s3517_s6 = smov 8  }
  0x14   :  { %37 = dma.hbm_to_vmem [thread:$0]  %s4187_s1, 2048, %s32_s19, [#allocation6], %s3516_s30, %s3516_s30, %s3517_s6  }
  0x15   :  { %s3418_s11 = scalar_lea.hbm %s4186_s0, 256 }
  0x16   :  { %p3419_p8 = scmp.ne.s32.totalorder %s4186_s0, %s3418_s11  ;;  %p3422_p9 = scmp.lt.u32.totalorder %s3418_s11, %s4186_s0 }
  0x18   :  { %p3424_p10 = pnand %p3422_p9, %p3419_p8 }
  0x1a   :  { %3427 = shalt.err (!%p3424_p10)
}
  0x1b   :  { %s3428_s16 = scalar_lea.vmem %s3561_s21, 256  ;;  %p3433_p12 = scmp.lt.s32.totalorder %s3561_s21, %s3561_s21 }
  0x1c   :  { %p3429_p11 = scmp.ne.s32.totalorder %s3561_s21, %s3428_s16  ;;  %p3434_p13 = scmp.lt.s32.totalorder %s3428_s16, %s3428_s16 }
  0x1e   :  { %p3435_p0 = por %p3434_p13, %p3433_p12 }
  0x20   :  { %p3436_p1 = pnand %p3435_p0, %p3429_p11 }
  0x22   :  { %3439 = shalt.err (!%p3436_p1)
}
  0x23   :  { %25 = dma.hbm_to_vmem [thread:$0]  %s4186_s0, 256, %s3561_s21, [#allocation3], %s3516_s30, %s3516_s30, %s3517_s6  }
  0x24   :  { %s3518_s18 = smov [#allocation7]   ;;  %s3440_s23 = scalar_lea.hbm %s4188_s2, 2560 }
  0x25   :  { %s43_s19 = sshll.u32 %s3518_s18, 4  ;;  %p3441_p2 = scmp.ne.s32.totalorder %s4188_s2, %s3440_s23  ;;  %s44_s19 = int_to_ptr.vmem [resolvable:$true] %s43_s19 }
  0x26   :  { %p3444_p3 = scmp.lt.u32.totalorder %s3440_s23, %s4188_s2 }
  0x28   :  { %p3446_p4 = pnand %p3444_p3, %p3441_p2 }
  0x2a   :  { %3449 = shalt.err (!%p3446_p4)
}
  0x2b   :  { %s3450_s28 = scalar_lea.vmem %s44_s19, 2560  ;;  %p3455_p6 = scmp.lt.s32.totalorder %s44_s19, %s44_s19 }
  0x2c   :  { %p3451_p5 = scmp.ne.s32.totalorder %s44_s19, %s3450_s28  ;;  %p3456_p7 = scmp.lt.s32.totalorder %s3450_s28, %s3450_s28 }
  0x2e   :  { %p3457_p8 = por %p3456_p7, %p3455_p6 }
  0x30   :  { %p3458_p9 = pnand %p3457_p8, %p3451_p5 }
  0x32   :  { %3461 = shalt.err (!%p3458_p9)
}
  0x33   :  { %s3519_s0 = smov 64   ;;  %s3520_s21 = smov 4  }
  0x34   :  { %49 = dma.hbm_to_vmem [thread:$0]  %s4188_s2, 2560, %s44_s19, [#allocation6], %s3519_s0, %s3519_s0, %s3520_s21  }
  0x35   :  { %s3521_s8 = smov [#allocation8]   ;;  %s3462_s12 = scalar_lea.hbm %s4189_s3, 256 }
  0x36   :  { %s55_s9 = sshll.u32 %s3521_s8, 4  ;;  %p3463_p10 = scmp.ne.s32.totalorder %s4189_s3, %s3462_s12  ;;  %s56_s9 = int_to_ptr.vmem [resolvable:$true] %s55_s9 }
  0x37   :  { %p3466_p11 = scmp.lt.u32.totalorder %s3462_s12, %s4189_s3 }
  0x39   :  { %p3468_p12 = pnand %p3466_p11, %p3463_p10 }
  0x3b   :  { %3471 = shalt.err (!%p3468_p12)
}
  0x3c   :  { %s3472_s1 = scalar_lea.vmem %s56_s9, 256  ;;  %p3477_p0 = scmp.lt.s32.totalorder %s56_s9, %s56_s9 }
  0x3d   :  { %p3473_p13 = scmp.ne.s32.totalorder %s56_s9, %s3472_s1  ;;  %p3478_p1 = scmp.lt.s32.totalorder %s3472_s1, %s3472_s1 }
  0x3f   :  { %p3479_p2 = por %p3478_p1, %p3477_p0 }
  0x41   :  { %p3480_p3 = pnand %p3479_p2, %p3473_p13 }
  0x43   :  { %3483 = shalt.err (!%p3480_p3)
}
  0x44   :  { %61 = dma.hbm_to_vmem [thread:$0]  %s4189_s3, 256, %s56_s9, [#allocation9], %s3516_s30, %s3516_s30, %s3517_s6  }
  0x45   :  { %3506 = dma.done.wait [#allocation3], 256  }
  0x46   :  { %3507 = vsyncadd [#allocation3], 4294967040 }
  0x47   :  { %3508 = dma.done.wait [#allocation6], 4608  }
  0x48   :  { %3509 = vsyncadd [#allocation6], 4294962688 }
  0x49   :  { %3510 = dma.done.wait [#allocation9], 256  }
  0x4a   :  { %3511 = vsyncadd [#allocation9], 4294967040  ;;  %v3522_v0 = vmov 0.0   ;;  %vm3523_vm0 = vmmov 0   ;;  %v3291_v1 = vld [vmem:[#allocation7] sm:$0xff]   ;;  %v3292_v2 = vld [vmem:[#allocation7 + $0x8] sm:$0xff]   ;;  %v101_v6 = vlaneseq }
  0x4b   :  { %2950 = vmatprep.subr.bf16.mxu1 %v3522_v0  ;;  %2954 = vmatprep.mubr.msk.bf16.mxu1 %vm3523_vm0, %v3522_v0  ;;  %v3633_v3 = vld [vmem:[#allocation2] sm:$0xff]  ;;  %v3635_v4 = vld [vmem:[#allocation2 + $0x8] sm:$0xff]  ;;  %vm117_vm1 = vcmask 261120   ;;  %v3647_v9 = vld [vmem:[#allocation8] sm:$0xff]  ;;  %s3524_s3 = smov 104   ;;  %s3525_s18 = smov 120  }
  0x4c   :  { %2964 = vmatprep.subr.bf16.mxu0 %v3522_v0  ;;  %2966 = vmatprep.mubr.msk.bf16.mxu0 %vm3523_vm0, %v3522_v0  ;;  %v100_v5 = vpack.c.bf16 %v3635_v4, %v3633_v3  ;;  %v3644_v7 = vshrl.u32 %v101_v6, 7  ;;  %s3526_s19 = smov 96   ;;  %s3527_s20 = smov 112   ;;  %vm193_vm2 = vcmask 64512   ;;  %vm708_vm3 = vcmask 1043456   ;;  %v591_v56 = vld [vmem:[#allocation5] sm:$0xff] }
  0x4d   :  { %2951 = vmatpush3.bf16.msra.mxu1 %v3291_v1  ;;  %v592_v63 = vld [vmem:[#allocation5 + $0x8] sm:$0xff]  ;;  %s3528_s22 = smov 16   ;;  %s3529_s23 = smov 24   ;;  %vm1114_vm4 = vcmask 130048   ;;  %vm1117_vm5 = vcmask 195584   ;;  %vm1318_vm6 = vcmask 523264  }
  0x4e   :  { %2952 = vmatprep.subr.bf16.mxu1 %v3522_v0  ;;  %v103_v8 = vsub.s32 0, %v3644_v7  ;;  %s3530_s28 = smov [#allocation10]  }
  0x50   :  { %v104_v10 = vrot.slane %v3647_v9, %v103_v8 }
  0x51   :  { %2953 = vmatpush3.bf16.msra.mxu1 %v3292_v2 }
  0x52   :  { %2958 = vmatprep.subr.bf16.mxu1 %v3522_v0 }
  0x54   :  { %2955 = vmatmul.mubr.msk.bf16.vlgmr.msra.gmra.mrb[0].mxu1 %vm117_vm1, %v100_v5 }
  0x55   :  { %2960 = vmatprep.mubr.msk.bf16.mxu1 %vm3523_vm0, %v3522_v0 }
 0x127   :  { %v155_v11 = vpop.f32.mrb[0].mxu1 }
 0x128   :  { %v2956_v12 = vpop.f32.mrb[1].mxu1  ;;  %v156_v14 = vadd.f32 %v155_v11, %v104_v10 }
 0x129   :  { %v158_v13 = vpop.f32.mrb[2].mxu1 }
 0x12a   :  { %v159_v15 = vadd.f32 %v158_v13, %v104_v10  ;;  %v2957_v16 = vpop.f32.mrb[3].mxu1  ;;  %v182_v18 = vpack.c.bf16 %v156_v14, %v156_v14 }
 0x12b   :  { %v593_v16 = vld [vmem:[#allocation5 + $0x10] sm:$0xff] }
 0x12c   :  { %v3241_v17 = vpack.i.bf16 %v159_v15, %v156_v14  ;;  %v183_v19 = vpack.c.bf16 %v159_v15, %v159_v15  ;;  %v594_v15 = vld [vmem:[#allocation5 + $0x18] sm:$0xff] }
 0x12e   :  { %3242 = vrot.lane.b32.xlu1 %v3241_v17, %s3524_s3  ;;  %3232 = vrot.lane.b32.xlu0 %v3241_v17, %s3525_s18 }
 0x132   :  { %191 = vrot.lane.b32.xlu1 %v182_v18, %s3526_s19  ;;  %3237 = vrot.lane.b32.xlu0 %v3241_v17, %s3527_s20 }
 0x136   :  { %241 = vrot.lane.b32.xlu0 %v183_v19, %s3526_s19 }
 0x1a0   :  { %v3243_v20 = vpop.permute.xlu1 %3242  ;;  %v3233_v21 = vpop.permute.xlu0 %3232 }
 0x1a1   :  { %v3235_v22 = vunpack.i.h.bf16 %v3233_v21  ;;  %v3234_v23 = vunpack.i.l.bf16 %v3233_v21  ;;  %v3244_v31 = vunpack.i.l.bf16 %v3243_v20  ;;  %v3245_v34 = vunpack.i.h.bf16 %v3243_v20 }
 0x1a3   :  { %v3657_v24 = vpack.c.bf16 %v3235_v22, %v3235_v22  ;;  %v3659_v25 = vpack.c.bf16 %v3234_v23, %v3234_v23  ;;  %v3676_v37 = vpack.c.bf16 %v3244_v31, %v3244_v31  ;;  %v3679_v38 = vpack.c.bf16 %v3245_v34, %v3245_v34 }
 0x1a4   :  { %v192_v26 = vpop.permute.xlu1 %191  ;;  %v3238_v27 = vpop.permute.xlu0 %3237 }
 0x1a5   :  { %v198_v28 = vsel %vm193_vm2, %v192_v26, 0  ;;  %v3240_v29 = vunpack.i.h.bf16 %v3238_v27  ;;  %v3239_v30 = vunpack.i.l.bf16 %v3238_v27  ;;  %290 = vrot.lane.b32.xlu1 %v3659_v25, %s3526_s19  ;;  %339 = vrot.lane.b32.xlu0 %v3657_v24, %s3526_s19 }
 0x1a6   :  { %2959 = vmatpush3.bf16.xpose.msra.mxu1 %v198_v28 }
 0x1a7   :  { %v3666_v32 = vpack.c.bf16 %v3240_v29, %v3240_v29  ;;  %v3668_v33 = vpack.c.bf16 %v3239_v30, %v3239_v30  ;;  %2970 = vmatprep.subr.bf16.mxu1 %v3522_v0 }
 0x1a8   :  { %v242_v35 = vpop.permute.xlu0 %241 }
 0x1a9   :  { %388 = vrot.lane.b32.xlu1 %v3668_v33, %s3526_s19  ;;  %437 = vrot.lane.b32.xlu0 %v3666_v32, %s3526_s19  ;;  %v247_v36 = vsel %vm193_vm2, %v242_v35, 0  ;;  %v596_v35 = vld [vmem:[#allocation5 + $0x28] sm:$0xff] }
 0x1aa   :  { %2965 = vmatpush3.bf16.xpose.msra.mxu0 %v247_v36  ;;  %v595_v36 = vld [vmem:[#allocation5 + $0x20] sm:$0xff] }
 0x1ab   :  { %2976 = vmatprep.subr.bf16.mxu0 %v3522_v0 }
 0x1ad   :  { %2961 = vmatmul.mubr.msk.bf16.vlgmr.msra.gmra.mrb[4].mxu1 %vm193_vm2, %v182_v18  ;;  %486 = vrot.lane.b32.xlu1 %v3676_v37, %s3526_s19 }
 0x1ae   :  { %535 = vrot.lane.b32.xlu0 %v3679_v38, %s3526_s19  ;;  %2972 = vmatprep.mubr.msk.bf16.mxu1 %vm3523_vm0, %v3522_v0 }
 0x1b1   :  { %752 = vrot.lane.b32.xlu1 %v183_v19, %s3519_s0  ;;  %2967 = vmatmul.mubr.msk.bf16.vlgmr.msra.gmra.mrb[0].mxu0 %vm193_vm2, %v183_v19 }
 0x1b2   :  { %703 = vrot.lane.b32.xlu0 %v182_v18, %s3519_s0  ;;  %2978 = vmatprep.mubr.msk.bf16.mxu0 %vm3523_vm0, %v3522_v0 }
 0x217   :  { %v291_v39 = vpop.permute.xlu1 %290  ;;  %v340_v40 = vpop.permute.xlu0 %339 }
 0x218   :  { %v296_v41 = vsel %vm193_vm2, %v291_v39, 0  ;;  %v345_v42 = vsel %vm193_vm2, %v340_v40, 0 }
 0x219   :  { %2971 = vmatpush3.bf16.xpose.msra.mxu1 %v296_v41  ;;  %2977 = vmatpush3.bf16.xpose.msra.mxu0 %v345_v42 }
 0x21a   :  { %2982 = vmatprep.subr.bf16.mxu1 %v3522_v0  ;;  %2988 = vmatprep.subr.bf16.mxu0 %v3522_v0 }
 0x21b   :  { %v389_v43 = vpop.permute.xlu1 %388  ;;  %v438_v44 = vpop.permute.xlu0 %437 }
 0x21c   :  { %v394_v45 = vsel %vm193_vm2, %v389_v43, 0  ;;  %v443_v46 = vsel %vm193_vm2, %v438_v44, 0 }
 0x21f   :  { %v487_v47 = vpop.permute.xlu1 %486 }
 0x220   :  { %2973 = vmatmul.mubr.msk.bf16.vlgmr.msra.gmra.mrb[8].mxu1 %vm193_vm2, %v3659_v25  ;;  %2979 = vmatmul.mubr.msk.bf16.vlgmr.msra.gmra.mrb[4].mxu0 %vm193_vm2, %v3657_v24  ;;  %v536_v48 = vpop.permute.xlu0 %535  ;;  %v492_v49 = vsel %vm193_vm2, %v487_v47, 0 }
 0x221   :  { %2983 = vmatpush3.bf16.xpose.msra.mxu1 %v394_v45  ;;  %2989 = vmatpush3.bf16.xpose.msra.mxu0 %v443_v46  ;;  %v541_v50 = vsel %vm193_vm2, %v536_v48, 0 }
 0x222   :  { %2984 = vmatprep.mubr.msk.bf16.mxu1 %vm3523_vm0, %v3522_v0  ;;  %2990 = vmatprep.mubr.msk.bf16.mxu0 %vm3523_vm0, %v3522_v0 }
 0x223   :  { %2994 = vmatprep.subr.bf16.mxu1 %v3522_v0  ;;  %3000 = vmatprep.subr.bf16.mxu0 %v3522_v0  ;;  %v753_v51 = vpop.permute.xlu1 %752 }
 0x224   :  { %v704_v52 = vpop.permute.xlu0 %703  ;;  %v758_v53 = vsel %vm708_vm3, %v753_v51, 0 }
 0x225   :  { %v710_v54 = vsel %vm708_vm3, %v704_v52, 0 }
 0x228   :  { %2985 = vmatmul.mubr.msk.bf16.vlgmr.msra.gmra.mrb[12].mxu1 %vm193_vm2, %v3668_v33  ;;  %2991 = vmatmul.mubr.msk.bf16.vlgmr.msra.gmra.mrb[8].mxu0 %vm193_vm2, %v3666_v32 }
 0x229   :  { %2995 = vmatpush3.bf16.xpose.msra.mxu1 %v492_v49  ;;  %3001 = vmatpush3.bf16.xpose.msra.mxu0 %v541_v50 }
 0x22a   :  { %2996 = vmatprep.mubr.msk.bf16.mxu1 %vm3523_vm0, %v3522_v0  ;;  %3002 = vmatprep.mubr.msk.bf16.mxu0 %vm3523_vm0, %v3522_v0 }
 0x22b   :  { %3006 = vmatprep.subr.bf16.mxu1 %v3522_v0  ;;  %3012 = vmatprep.subr.bf16.mxu0 %v3522_v0 }
 0x230   :  { %2997 = vmatmul.mubr.msk.bf16.vlgmr.msra.gmra.mrb[16].mxu1 %vm193_vm2, %v3676_v37  ;;  %3003 = vmatmul.mubr.msk.bf16.vlgmr.msra.gmra.mrb[12].mxu0 %vm193_vm2, %v3679_v38 }
 0x231   :  { %3007 = vmatpush3.bf16.msra.mxu1 %v710_v54  ;;  %3013 = vmatpush3.bf16.msra.mxu0 %v758_v53  ;;  %v598_v53 = vld [vmem:[#allocation5 + $0x38] sm:$0xff]  ;;  %v597_v54 = vld [vmem:[#allocation5 + $0x30] sm:$0xff] }
 0x232   :  { %3008 = vmatprep.mubr.msk.bf16.mxu1 %vm3523_vm0, %v3522_v0  ;;  %3014 = vmatprep.mubr.msk.bf16.mxu0 %vm3523_vm0, %v3522_v0 }
 0x233   :  { %3018 = vmatprep.subr.bf16.mxu1 %v3522_v0  ;;  %3024 = vmatprep.subr.bf16.mxu0 %v3522_v0 }
 0x280   :  { %v234_v55 = vpop.f32.mrb[4].mxu1 }
 0x281   :  { %v583_v57 = vmul.f32 0.35355338, %v234_v55  ;;  %v2962_v58 = vpop.f32.mrb[5].mxu1 }
 0x282   :  { %v237_v59 = vpop.f32.mrb[6].mxu1 }
 0x283   :  { %v2963_v60 = vpop.f32.mrb[7].mxu1  ;;  %v3733_v61 = vadd.f32 %v591_v56, %v583_v57 }
 0x284   :  { %v283_v62 = vpop.f32.mrb[0].mxu0 }
 0x285   :  { %v584_v1 = vmul.f32 0.35355338, %v283_v62  ;;  %v2968_v2 = vpop.f32.mrb[1].mxu0  ;;  %v607_v5 = vsel %vm193_vm2, %v3733_v61, -inf }
 0x286   :  { %v286_v6 = vpop.f32.mrb[2].mxu0  ;;  %608 = vmax.xlane.f32.xlu1 %v607_v5 }
 0x287   :  { %v2969_v10 = vpop.f32.mrb[3].mxu0  ;;  %v3737_v11 = vadd.f32 %v592_v63, %v584_v1 }
 0x289   :  { %v610_v12 = vsel %vm193_vm2, %v3737_v11, -inf }
 0x28a   :  { %611 = vmax.xlane.f32.xlu0 %v610_v12 }
 0x2f3   :  { %v332_v13 = vpop.f32.mrb[8].mxu1  ;;  %v381_v14 = vpop.f32.mrb[4].mxu0 }
 0x2f4   :  { %v585_v17 = vmul.f32 0.35355338, %v332_v13  ;;  %v586_v18 = vmul.f32 0.35355338, %v381_v14  ;;  %v2974_v19 = vpop.f32.mrb[9].mxu1  ;;  %v2980_v20 = vpop.f32.mrb[5].mxu0 }
 0x2f5   :  { %v335_v21 = vpop.f32.mrb[10].mxu1  ;;  %v384_v22 = vpop.f32.mrb[6].mxu0 }
 0x2f6   :  { %v2975_v23 = vpop.f32.mrb[11].mxu1  ;;  %v2981_v26 = vpop.f32.mrb[7].mxu0  ;;  %v3741_v27 = vadd.f32 %v594_v15, %v586_v18  ;;  %v3743_v28 = vadd.f32 %v593_v16, %v585_v17 }
 0x2f8   :  { %v616_v29 = vsel %vm193_vm2, %v3741_v27, -inf  ;;  %v613_v30 = vsel %vm193_vm2, %v3743_v28, -inf }
 0x2f9   :  { %617 = vmax.xlane.f32.xlu1 %v616_v29  ;;  %614 = vmax.xlane.f32.xlu0 %v613_v30 }
 0x2fb   :  { %v430_v31 = vpop.f32.mrb[12].mxu1  ;;  %v479_v34 = vpop.f32.mrb[8].mxu0 }
 0x2fc   :  { %v587_v39 = vmul.f32 0.35355338, %v430_v31  ;;  %v588_v40 = vmul.f32 0.35355338, %v479_v34  ;;  %v2986_v41 = vpop.f32.mrb[13].mxu1  ;;  %v2992_v42 = vpop.f32.mrb[9].mxu0 }
 0x2fd   :  { %v433_v43 = vpop.f32.mrb[14].mxu1  ;;  %v482_v44 = vpop.f32.mrb[10].mxu0 }
 0x2fe   :  { %v2987_v45 = vpop.f32.mrb[15].mxu1  ;;  %v2993_v46 = vpop.f32.mrb[11].mxu0  ;;  %v604_v47 = vadd.f32 %v596_v35, %v588_v40  ;;  %v3749_v48 = vadd.f32 %v595_v36, %v587_v39 }
 0x300   :  { %v622_v49 = vsel %vm193_vm2, %v604_v47, -inf  ;;  %v619_v50 = vsel %vm193_vm2, %v3749_v48, -inf }
 0x301   :  { %623 = vmax.xlane.f32.xlu1 %v622_v49  ;;  %620 = vmax.xlane.f32.xlu0 %v619_v50 }
 0x303   :  { %v528_v51 = vpop.f32.mrb[16].mxu1  ;;  %v577_v52 = vpop.f32.mrb[12].mxu0 }
 0x304   :  { %v589_v55 = vmul.f32 0.35355338, %v528_v51  ;;  %v590_v56 = vmul.f32 0.35355338, %v577_v52  ;;  %v2998_v57 = vpop.f32.mrb[17].mxu1  ;;  %v3004_v58 = vpop.f32.mrb[13].mxu0 }
 0x305   :  { %v531_v59 = vpop.f32.mrb[18].mxu1  ;;  %v580_v60 = vpop.f32.mrb[14].mxu0 }
 0x306   :  { %v2999_v62 = vpop.f32.mrb[19].mxu1  ;;  %v3005_v63 = vpop.f32.mrb[15].mxu0  ;;  %v606_v1 = vadd.f32 %v598_v53, %v590_v56  ;;  %v605_v2 = vadd.f32 %v597_v54, %v589_v55 }
 0x308   :  { %v628_v5 = vsel %vm193_vm2, %v606_v1, -inf  ;;  %v625_v6 = vsel %vm193_vm2, %v605_v2, -inf }
 0x309   :  { %629 = vmax.xlane.f32.xlu1 %v628_v5  ;;  %626 = vmax.xlane.f32.xlu0 %v625_v6 }
 0x313   :  { %v609_v10 = vpop.xlane.xlu1 %608 }
 0x314   :  { %v631_v13 = vsub.f32 %v3733_v61, %v609_v10 }
 0x316   :  { %v639_v15 = vmul.f32 1.442695, %v631_v13 }
 0x317   :  { %v612_v12 = vpop.xlane.xlu0 %611 }
 0x318   :  { %v632_v14 = vsub.f32 %v3737_v11, %v612_v12  ;;  %3311 = vpow2.f32 %v639_v15 }
 0x31a   :  { %800 = vrot.lane.b32.xlu1 %v3659_v25, %s3519_s0  ;;  %v641_v16 = vmul.f32 1.442695, %v632_v14 }
 0x31c   :  { %3313 = vpow2.f32 %v641_v16 }
 0x31f   :  { %848 = vrot.lane.b32.xlu0 %v3657_v24, %s3519_s0 }
 0x322   :  { %v3312_v17 = vpop.eup %3311 }
 0x323   :  { %v655_v20 = vsel %vm193_vm2, %v3312_v17, 0.0 }
 0x326   :  { %v3314_v18 = vpop.eup %3313 }
 0x327   :  { %v658_v19 = vsel %vm193_vm2, %v3314_v18, 0.0 }
 0x33e   :  { %659 = vadd.xlane.f32.xlu1 %v658_v19  ;;  %656 = vadd.xlane.f32.xlu0 %v655_v20 }
 0x34f   :  { %896 = vrot.lane.b32.xlu1 %v3668_v33, %s3519_s0 }
 0x386   :  { %v618_v24 = vpop.xlane.xlu1 %617  ;;  %v615_v25 = vpop.xlane.xlu0 %614 }
 0x387   :  { %v634_v61 = vsub.f32 %v3741_v27, %v618_v24  ;;  %v633_v11 = vsub.f32 %v3743_v28, %v615_v25 }
 0x389   :  { %v645_v21 = vmul.f32 1.442695, %v634_v61  ;;  %v643_v22 = vmul.f32 1.442695, %v633_v11 }
 0x38b   :  { %3315 = vpow2.f32 %v645_v21 }
 0x38c   :  { %3317 = vpow2.f32 %v643_v22 }
 0x38e   :  { %v624_v23 = vpop.xlane.xlu1 %623  ;;  %v621_v42 = vpop.xlane.xlu0 %620 }
 0x38f   :  { %v636_v26 = vsub.f32 %v604_v47, %v624_v23  ;;  %v635_v43 = vsub.f32 %v3749_v48, %v621_v42 }
 0x391   :  { %v649_v29 = vmul.f32 1.442695, %v636_v26  ;;  %v647_v45 = vmul.f32 1.442695, %v635_v43 }
 0x393   :  { %3319 = vpow2.f32 %v649_v29 }
 0x395   :  { %v3768_v30 = vpop.eup %3315 }
 0x396   :  { %v3770_v31 = vpop.eup %3317  ;;  %v630_v34 = vpop.xlane.xlu1 %629  ;;  %v664_v33 = vsel %vm193_vm2, %v3768_v30, 0.0 }
 0x397   :  { %v638_v35 = vsub.f32 %v606_v1, %v630_v34  ;;  %665 = vadd.xlane.f32.xlu1 %v664_v33  ;;  %v661_v27 = vsel %vm193_vm2, %v3770_v31, 0.0  ;;  %v627_v44 = vpop.xlane.xlu0 %626 }
 0x398   :  { %662 = vadd.xlane.f32.xlu0 %v661_v27  ;;  %v637_v46 = vsub.f32 %v605_v2, %v627_v44 }
 0x399   :  { %v653_v28 = vmul.f32 1.442695, %v638_v35 }
 0x39a   :  { %v651_v47 = vmul.f32 1.442695, %v637_v46  ;;  %v801_v49 = vpop.permute.xlu1 %800 }
 0x39b   :  { %3321 = vpow2.f32 %v653_v28  ;;  %v849_v50 = vpop.permute.xlu0 %848  ;;  %v806_v62 = vsel %vm708_vm3, %v801_v49, 0 }
 0x39c   :  { %3323 = vpow2.f32 %v647_v45  ;;  %v854_v60 = vsel %vm708_vm3, %v849_v50, 0 }
 0x39d   :  { %v3776_v36 = vpop.eup %3319  ;;  %3325 = vpow2.f32 %v651_v47 }
 0x39e   :  { %v670_v39 = vsel %vm193_vm2, %v3776_v36, 0.0 }
 0x39f   :  { %671 = vadd.xlane.f32.xlu1 %v670_v39 }
 0x3a5   :  { %v3780_v40 = vpop.eup %3321 }
 0x3a6   :  { %v676_v41 = vsel %vm193_vm2, %v3780_v40, 0.0  ;;  %v3789_v51 = vpop.eup %3323 }
 0x3a7   :  { %677 = vadd.xlane.f32.xlu1 %v676_v41  ;;  %v3793_v48 = vpop.eup %3325 }
 0x3ae   :  { %944 = vrot.lane.b32.xlu0 %v3666_v32, %s3519_s0  ;;  %v667_v32 = vsel %vm193_vm2, %v3789_v51, 0.0 }
 0x3b8   :  { %992 = vrot.lane.b32.xlu1 %v3676_v37, %s3519_s0  ;;  %v673_v37 = vsel %vm193_vm2, %v3793_v48, 0.0 }
 0x3cb   :  { %v660_v52 = vpop.xlane.xlu1 %659  ;;  %v657_v53 = vpop.xlane.xlu0 %656 }
 0x3cc   :  { %3327 = vrcp.f32 %v660_v52 }
 0x3cd   :  { %3329 = vrcp.f32 %v657_v53  ;;  %668 = vadd.xlane.f32.xlu0 %v667_v32 }
 0x3cf   :  { %v897_v63 = vpop.permute.xlu1 %896 }
 0x3d1   :  { %674 = vadd.xlane.f32.xlu0 %v673_v37 }
 0x3d6   :  { %v3328_v54 = vpop.eup %3327 }
 0x3d7   :  { %v3330_v55 = vpop.eup %3329  ;;  %v688_v56 = vmul.f32 %v3328_v54, %v3314_v18 }
 0x3d8   :  { %v687_v57 = vmul.f32 %v3330_v55, %v3312_v17 }
 0x3d9   :  { %v696_v58 = vpack.c.bf16 %v688_v56, %v688_v56 }
 0x3da   :  { %v695_v59 = vpack.c.bf16 %v687_v57, %v687_v57  ;;  %v3293_v57 = vld [vmem:[#allocation7 + $0x10] sm:$0xff]  }
 0x3db   :  { %3015 = vmatmul.mubr.msk.bf16.vlgmr.msra.gmra.mrb[16].mxu0 %vm193_vm2, %v696_v58 }
 0x3dc   :  { %3009 = vmatmul.mubr.msk.bf16.vlgmr.msra.gmra.mrb[20].mxu1 %vm193_vm2, %v695_v59  ;;  %3025 = vmatpush3.bf16.msra.mxu0 %v854_v60 }
 0x3dd   :  { %3019 = vmatpush3.bf16.msra.mxu1 %v806_v62  ;;  %3020 = vmatprep.mubr.msk.bf16.mxu1 %vm3523_vm0, %v3522_v0  ;;  %v3294_v62 = vld [vmem:[#allocation7 + $0x18] sm:$0xff]  }
 0x3de   :  { %3026 = vmatprep.mubr.msk.bf16.mxu0 %vm3523_vm0, %v3522_v0  ;;  %3030 = vmatprep.subr.bf16.mxu1 %v3522_v0 }
 0x3df   :  { %3036 = vmatprep.subr.bf16.mxu0 %v3522_v0 }
 0x3e7   :  { %1040 = vrot.lane.b32.xlu0 %v3679_v38, %s3519_s0  ;;  %v902_v38 = vsel %vm708_vm3, %v897_v63, 0 }
 0x424   :  { %v666_v1 = vpop.xlane.xlu1 %665 }
 0x425   :  { %3331 = vrcp.f32 %v666_v1  ;;  %v663_v2 = vpop.xlane.xlu0 %662 }
 0x426   :  { %3333 = vrcp.f32 %v663_v2 }
 0x429   :  { %v945_v14 = vpop.permute.xlu0 %944 }
 0x42a   :  { %v950_v17 = vsel %vm708_vm3, %v945_v14, 0 }
 0x42c   :  { %v672_v5 = vpop.xlane.xlu1 %671 }
 0x42d   :  { %3335 = vrcp.f32 %v672_v5 }
 0x42f   :  { %v3332_v6 = vpop.eup %3331 }
 0x430   :  { %v3334_v10 = vpop.eup %3333  ;;  %v690_v12 = vmul.f32 %v3332_v6, %v3768_v30 }
 0x431   :  { %v689_v13 = vmul.f32 %v3334_v10, %v3770_v31 }
 0x432   :  { %v698_v15 = vpack.c.bf16 %v690_v12, %v690_v12 }
 0x433   :  { %v697_v16 = vpack.c.bf16 %v689_v13, %v689_v13 }
 0x434   :  { %3027 = vmatmul.mubr.msk.bf16.vlgmr.msra.gmra.mrb[20].mxu0 %vm193_vm2, %v698_v15  ;;  %v678_v24 = vpop.xlane.xlu1 %677 }
 0x435   :  { %3021 = vmatmul.mubr.msk.bf16.vlgmr.msra.gmra.mrb[24].mxu1 %vm193_vm2, %v697_v16  ;;  %3037 = vmatpush3.bf16.msra.mxu0 %v950_v17  ;;  %3337 = vrcp.f32 %v678_v24 }
 0x436   :  { %3031 = vmatpush3.bf16.msra.mxu1 %v902_v38  ;;  %3038 = vmatprep.mubr.msk.bf16.mxu0 %vm3523_vm0, %v3522_v0 }
 0x437   :  { %v3336_v18 = vpop.eup %3335  ;;  %3048 = vmatprep.subr.bf16.mxu0 %v3522_v0  ;;  %3032 = vmatprep.mubr.msk.bf16.mxu1 %vm3523_vm0, %v3522_v0 }
 0x438   :  { %v692_v19 = vmul.f32 %v3336_v18, %v3776_v36  ;;  %3042 = vmatprep.subr.bf16.mxu1 %v3522_v0  ;;  %v993_v31 = vpop.permute.xlu1 %992 }
 0x439   :  { %v998_v35 = vsel %vm708_vm3, %v993_v31, 0 }
 0x43a   :  { %v700_v20 = vpack.c.bf16 %v692_v19, %v692_v19 }
 0x43c   :  { %3039 = vmatmul.mubr.msk.bf16.vlgmr.msra.gmra.mrb[24].mxu0 %vm193_vm2, %v700_v20 }
 0x43d   :  { %3050 = vmatprep.mubr.msk.bf16.mxu0 %vm3523_vm0, %v3522_v0 }
 0x43f   :  { %v3338_v61 = vpop.eup %3337 }
 0x440   :  { %v694_v21 = vmul.f32 %v3338_v61, %v3780_v40 }
 0x442   :  { %v702_v29 = vpack.c.bf16 %v694_v21, %v694_v21 }
 0x45a   :  { %v669_v25 = vpop.xlane.xlu0 %668 }
 0x45b   :  { %3339 = vrcp.f32 %v669_v25 }
 0x45e   :  { %v675_v11 = vpop.xlane.xlu0 %674 }
 0x45f   :  { %3341 = vrcp.f32 %v675_v11 }
 0x462   :  { %v1041_v22 = vpop.permute.xlu0 %1040 }
 0x463   :  { %v1046_v23 = vsel %vm708_vm3, %v1041_v22, 0 }
 0x464   :  { %3049 = vmatpush3.bf16.msra.mxu0 %v1046_v23 }
 0x465   :  { %v3340_v26 = vpop.eup %3339  ;;  %3062 = vmatprep.subr.bf16.mxu0 %v3522_v0 }
 0x466   :  { %v691_v30 = vmul.f32 %v3340_v26, %v3789_v51 }
 0x467   :  { %3051 = vmatmul.mubr.msk.bf16.vlgmr.msra.gmra.mrb[28].mxu0 %vm193_vm2, %v702_v29 }
 0x468   :  { %v699_v34 = vpack.c.bf16 %v691_v30, %v691_v30  ;;  %3066 = vmatprep.mubr.msk.bf16.mxu0 %vm3523_vm0, %v3522_v0 }
 0x469   :  { %v3342_v33 = vpop.eup %3341 }
 0x46a   :  { %3033 = vmatmul.mubr.msk.bf16.vlgmr.msra.gmra.mrb[28].mxu1 %vm193_vm2, %v699_v34  ;;  %v693_v27 = vmul.f32 %v3342_v33, %v3793_v48  ;;  %v1123_v34 = vsub.s32 2, %v3644_v7 }
 0x46b   :  { %3043 = vmatpush3.bf16.msra.mxu1 %v998_v35  ;;  %3044 = vmatprep.mubr.msk.bf16.mxu1 %vm3523_vm0, %v3522_v0 }
 0x46c   :  { %3054 = vmatprep.subr.bf16.mxu1 %v3522_v0  ;;  %v701_v28 = vpack.c.bf16 %v693_v27, %v693_v27  ;;  %v1124_v33 = vrot.slane %v3647_v9, %v1123_v34 }
 0x472   :  { %3045 = vmatmul.mubr.msk.bf16.vlgmr.msra.gmra.mrb[32].mxu1 %vm193_vm2, %v701_v28 }
 0x473   :  { %3058 = vmatprep.mubr.msk.bf16.mxu1 %vm3523_vm0, %v3522_v0  ;;  %3055 = vmatpush3.bf16.msra.mxu1 %v3293_v57 }
 0x474   :  { %3056 = vmatprep.subr.bf16.mxu1 %v3522_v0 }
 0x477   :  { %3057 = vmatpush3.bf16.msra.mxu1 %v3294_v62 }
 0x478   :  { %3070 = vmatprep.subr.bf16.mxu1 %v3522_v0 }
 0x4ae   :  { %v794_v36 = vpop.f32.mrb[16].mxu0 }
 0x4af   :  { %v746_v39 = vpop.f32.mrb[20].mxu1  ;;  %v3016_v40 = vpop.f32.mrb[17].mxu0 }
 0x4b0   :  { %v3010_v41 = vpop.f32.mrb[21].mxu1  ;;  %v797_v42 = vpop.f32.mrb[18].mxu0 }
 0x4b1   :  { %v749_v43 = vpop.f32.mrb[22].mxu1  ;;  %v3017_v44 = vpop.f32.mrb[19].mxu0 }
 0x4b2   :  { %v3011_v45 = vpop.f32.mrb[23].mxu1 }
 0x507   :  { %v890_v46 = vpop.f32.mrb[20].mxu0 }
 0x508   :  { %v842_v47 = vpop.f32.mrb[24].mxu1  ;;  %v3028_v49 = vpop.f32.mrb[21].mxu0 }
 0x509   :  { %v3246_v50 = vpack.i.bf16 %v890_v46, %v842_v47  ;;  %v3022_v51 = vpop.f32.mrb[25].mxu1  ;;  %v893_v52 = vpop.f32.mrb[22].mxu0 }
 0x50a   :  { %v845_v53 = vpop.f32.mrb[26].mxu1  ;;  %v3029_v32 = vpop.f32.mrb[23].mxu0  ;;  %v3298_v51 = vld [vmem:[#allocation7 + $0x38] sm:$0xff]  }
 0x50b   :  { %3247 = vrot.lane.b32.xlu1 %v3246_v50, %s3517_s6  ;;  %v3023_v48 = vpop.f32.mrb[27].mxu1  ;;  %v3295_v50 = vld [vmem:[#allocation7 + $0x20] sm:$0xff]  }
 0x50c   :  { %3063 = vmatpush3.bf16.msra.mxu0 %v3295_v50 }
 0x50d   :  { %3064 = vmatprep.subr.bf16.mxu0 %v3522_v0 }
 0x50f   :  { %v986_v37 = vpop.f32.mrb[24].mxu0 }
 0x510   :  { %v3040_v54 = vpop.f32.mrb[25].mxu0 }
 0x511   :  { %v989_v55 = vpop.f32.mrb[26].mxu0 }
 0x512   :  { %v3041_v56 = vpop.f32.mrb[27].mxu0 }
 0x53a   :  { %v1082_v58 = vpop.f32.mrb[28].mxu0 }
 0x53b   :  { %v3052_v59 = vpop.f32.mrb[29].mxu0 }
 0x53c   :  { %v1085_v60 = vpop.f32.mrb[30].mxu0 }
 0x53d   :  { %v938_v63 = vpop.f32.mrb[28].mxu1  ;;  %v3053_v1 = vpop.f32.mrb[31].mxu0 }
 0x53e   :  { %v3251_v2 = vpack.i.bf16 %v986_v37, %v938_v63  ;;  %v3034_v5 = vpop.f32.mrb[29].mxu1  ;;  %v1216_v1 = vsub.s32 4, %v3644_v7 }
 0x53f   :  { %v941_v6 = vpop.f32.mrb[30].mxu1 }
 0x540   :  { %3252 = vrot.lane.b32.xlu0 %v3251_v2, %s3528_s22  ;;  %v3035_v10 = vpop.f32.mrb[31].mxu1 }
 0x541   :  { %v1217_v10 = vrot.slane %v3647_v9, %v1216_v1 }
 0x545   :  { %v1034_v12 = vpop.f32.mrb[32].mxu1 }
 0x546   :  { %v3256_v13 = vpack.i.bf16 %v1082_v58, %v1034_v12  ;;  %v3046_v14 = vpop.f32.mrb[33].mxu1  ;;  %v1222_v12 = vsub.s32 5, %v3644_v7 }
 0x547   :  { %v1037_v15 = vpop.f32.mrb[34].mxu1 }
 0x548   :  { %3257 = vrot.lane.b32.xlu1 %v3256_v13, %s3529_s23  ;;  %v3047_v16 = vpop.f32.mrb[35].mxu1 }
 0x57d   :  { %v3248_v17 = vpop.permute.xlu1 %3247 }
 0x57e   :  { %v3250_v18 = vunpack.i.h.bf16 %v3248_v17  ;;  %v3249_v19 = vunpack.i.l.bf16 %v3248_v17  ;;  %v1223_v17 = vrot.slane %v3647_v9, %v1222_v12 }
 0x580   :  { %v1113_v61 = vsel %vm193_vm2, %v794_v36, %v3250_v18  ;;  %v1112_v11 = vsel %vm193_vm2, %v746_v39, %v3249_v19 }
 0x5b2   :  { %v3253_v38 = vpop.permute.xlu0 %3252 }
 0x5b3   :  { %v3255_v20 = vunpack.i.h.bf16 %v3253_v38  ;;  %v3254_v24 = vunpack.i.l.bf16 %v3253_v38 }
 0x5b5   :  { %v1116_v23 = vsel %vm1114_vm4, %v1113_v61, %v3255_v20  ;;  %v1115_v26 = vsel %vm1114_vm4, %v1112_v11, %v3254_v24  ;;  %v3299_v24 = vld [vmem:[#allocation7 + $0x40] sm:$0xff]   ;;  %v1229_v61 = vsub.s32 1, %v3644_v7 }
 0x5b7   :  { %v1230_v11 = vrot.slane %v3647_v9, %v1229_v61 }
 0x5ba   :  { %v3258_v25 = vpop.permute.xlu1 %3257 }
 0x5bb   :  { %v3260_v21 = vunpack.i.h.bf16 %v3258_v25  ;;  %v3259_v22 = vunpack.i.l.bf16 %v3258_v25  ;;  %v3300_v25 = vld [vmem:[#allocation7 + $0x48] sm:$0xff]  }
 0x5bd   :  { %v1119_v29 = vsel %vm1117_vm5, %v1116_v23, %v3260_v21  ;;  %v1118_v30 = vsel %vm1117_vm5, %v1115_v26, %v3259_v22 }
 0x5be   :  { %v1120_v31 = vpack.c.bf16 %v1119_v29, %v1118_v30 }
 0x5c0   :  { %3059 = vmatmul.mubr.msk.bf16.vlgmr.msra.gmra.mrb[36].mxu1 %vm117_vm1, %v1120_v31 }
 0x5c1   :  { %3078 = vmatprep.mubr.msk.bf16.mxu1 %vm3523_vm0, %v3522_v0 }
 0x693   :  { %v1174_v35 = vpop.f32.mrb[36].mxu1 }
 0x694   :  { %v1175_v27 = vadd.f32 %v1174_v35, %v1124_v33  ;;  %v3060_v28 = vpop.f32.mrb[37].mxu1 }
 0x695   :  { %v1177_v36 = vpop.f32.mrb[38].mxu1 }
 0x696   :  { %v1181_v39 = vadd.f32 %v1175_v27, %v3633_v3  ;;  %v1178_v40 = vadd.f32 %v1177_v36, %v1124_v33  ;;  %v3061_v41 = vpop.f32.mrb[39].mxu1  ;;  %v3296_v3 = vld [vmem:[#allocation7 + $0x28] sm:$0xff]   ;;  %v1292_v27 = vsub.s32 3, %v3644_v7 }
 0x697   :  { %3065 = vmatpush3.bf16.msra.mxu0 %v3296_v3 }
 0x698   :  { %v1182_v42 = vadd.f32 %v1178_v40, %v3635_v4  ;;  %v1183_v43 = vsel %vm117_vm1, %v1181_v39, 0.0  ;;  %v1192_v44 = vmul.f32 %v1181_v39, %v1181_v39  ;;  %3082 = vmatprep.subr.bf16.mxu0 %v3522_v0  ;;  %v3297_v4 = vld [vmem:[#allocation7 + $0x30] sm:$0xff]   ;;  %v1293_v28 = vrot.slane %v3647_v9, %v1292_v27 }
 0x699   :  { %1184 = vadd.xlane.f32.xlu0 %v1183_v43  ;;  %3071 = vmatpush3.bf16.msra.mxu1 %v3297_v4  ;;  %v3301_v4 = vld [vmem:[#allocation7 + $0x50] sm:$0xff]  }
 0x69a   :  { %v1186_v45 = vsel %vm117_vm1, %v1182_v42, 0.0  ;;  %v1194_v46 = vsel %vm117_vm1, %v1192_v44, 0.0  ;;  %v1193_v47 = vmul.f32 %v1182_v42, %v1182_v42  ;;  %3072 = vmatprep.subr.bf16.mxu1 %v3522_v0 }
 0x69b   :  { %1187 = vadd.xlane.f32.xlu1 %v1186_v45 }
 0x69c   :  { %v1197_v49 = vsel %vm117_vm1, %v1193_v47, 0.0 }
 0x69d   :  { %1195 = vadd.xlane.f32.xlu0 %v1194_v46  ;;  %3073 = vmatpush3.bf16.msra.mxu1 %v3298_v51  ;;  %v3302_v51 = vld [vmem:[#allocation7 + $0x58] sm:$0xff]  }
 0x69e   :  { %3074 = vmatprep.subr.bf16.mxu1 %v3522_v0 }
 0x6a1   :  { %1198 = vadd.xlane.f32.xlu0 %v1197_v49  ;;  %3075 = vmatpush3.bf16.msra.mxu1 %v3299_v24 }
 0x6a2   :  { %3076 = vmatprep.subr.bf16.mxu1 %v3522_v0 }
 0x6a5   :  { %3077 = vmatpush3.bf16.msra.mxu1 %v3300_v25 }
 0x6a6   :  { %3096 = vmatprep.subr.bf16.mxu1 %v3522_v0 }
 0x726   :  { %v1185_v52 = vpop.xlane.xlu0 %1184 }
 0x727   :  { %v1190_v53 = vmul.f32 0.03125, %v1185_v52 }
 0x728   :  { %v1188_v32 = vpop.xlane.xlu1 %1187 }
 0x729   :  { %v1202_v37 = vmul.f32 %v1190_v53, %v1190_v53  ;;  %v1191_v54 = vmul.f32 0.03125, %v1188_v32  ;;  %v1206_v2 = vsub.f32 %v1181_v39, %v1190_v53 }
 0x72a   :  { %v1196_v48 = vpop.xlane.xlu0 %1195 }
 0x72b   :  { %v1200_v55 = vmul.f32 0.03125, %v1196_v48  ;;  %v1203_v58 = vmul.f32 %v1191_v54, %v1191_v54  ;;  %v1207_v13 = vsub.f32 %v1182_v42, %v1191_v54 }
 0x72d   :  { %v1204_v56 = vsub.f32 %v1200_v55, %v1202_v37 }
 0x72e   :  { %v1199_v57 = vpop.xlane.xlu0 %1198 }
 0x72f   :  { %v1208_v59 = vadd.f32 1e-05, %v1204_v56  ;;  %v1201_v60 = vmul.f32 0.03125, %v1199_v57 }
 0x731   :  { %3343 = vrsqrt.f32 %v1208_v59  ;;  %v1205_v62 = vsub.f32 %v1201_v60, %v1203_v58 }
 0x733   :  { %v1209_v63 = vadd.f32 1e-05, %v1205_v62 }
 0x735   :  { %3345 = vrsqrt.f32 %v1209_v63 }
 0x73b   :  { %v3344_v5 = vpop.eup %3343 }
 0x73c   :  { %v1212_v6 = vmul.f32 %v3344_v5, %v1206_v2  ;;  %v1397_v2 = vsub.s32 6, %v3644_v7 }
 0x73e   :  { %v1218_v16 = vmul.f32 %v1217_v10, %v1212_v6  ;;  %v3395_v6 = vld [vmem:[#allocation8] sm:$0xff] }
 0x73f   :  { %v3346_v14 = vpop.eup %3345 }
 0x740   :  { %v1213_v15 = vmul.f32 %v3346_v14, %v1207_v13  ;;  %v1224_v18 = vadd.f32 %v1223_v17, %v1218_v16  ;;  %v1403_v13 = vsub.s32 7, %v3644_v7 }
 0x742   :  { %v1219_v38 = vmul.f32 %v1217_v10, %v1213_v15  ;;  %v1398_v10 = vrot.slane %v3395_v6, %v1397_v2 }
 0x744   :  { %v1225_v19 = vadd.f32 %v1223_v17, %v1219_v38 }
 0x746   :  { %v1226_v20 = vpack.c.bf16 %v1225_v19, %v1224_v18 }
 0x748   :  { %3067 = vmatmul.mubr.msk.bf16.vlgmr.msra.gmra.mrb[32].mxu0 %vm117_vm1, %v1226_v20 }
 0x749   :  { %3086 = vmatprep.mubr.msk.bf16.mxu0 %vm3523_vm0, %v3522_v0  ;;  %3083 = vmatpush3.bf16.msra.mxu0 %v3301_v4 }
 0x74a   :  { %3084 = vmatprep.subr.bf16.mxu0 %v3522_v0 }
 0x74d   :  { %3085 = vmatpush3.bf16.msra.mxu0 %v3302_v51 }
 0x74e   :  { %3090 = vmatprep.subr.bf16.mxu0 %v3522_v0 }
 0x81b   :  { %v1280_v21 = vpop.f32.mrb[32].mxu0 }
 0x81c   :  { %v1281_v22 = vadd.f32 %v1280_v21, %v1230_v11  ;;  %v3068_v23 = vpop.f32.mrb[33].mxu0  ;;  %v3914_v21 = vld [vmem:[#allocation8 + $0x8] sm:$0xff] }
 0x81d   :  { %v1283_v26 = vpop.f32.mrb[34].mxu0 }
 0x81e   :  { %v1284_v29 = vadd.f32 %v1283_v26, %v1230_v11  ;;  %v3069_v30 = vpop.f32.mrb[35].mxu0  ;;  %v1287_v31 = vmax.f32 %v1281_v22, 0.0  ;;  %v1434_v22 = vrot.slane %v3914_v21, %v103_v8 }
 0x820   :  { %v1288_v33 = vmax.f32 %v1284_v29, 0.0 }
 0x822   :  { %v1289_v35 = vpack.c.bf16 %v1288_v33, %v1287_v31 }
 0x824   :  { %3079 = vmatmul.mubr.msk.bf16.vlgmr.msra.gmra.mrb[40].mxu1 %vm1318_vm6, %v1289_v35 }
 0x825   :  { %3098 = vmatprep.mubr.msk.bf16.mxu1 %vm3523_vm0, %v3522_v0 }
 0x8f7   :  { %v1356_v36 = vpop.f32.mrb[40].mxu1 }
 0x8f8   :  { %v1357_v39 = vadd.f32 %v1356_v36, %v1293_v28  ;;  %v3080_v40 = vpop.f32.mrb[41].mxu1 }
 0x8f9   :  { %v1359_v41 = vpop.f32.mrb[42].mxu1 }
 0x8fa   :  { %v1363_v42 = vadd.f32 %v1357_v39, %v1224_v18  ;;  %v1360_v43 = vadd.f32 %v1359_v41, %v1293_v28  ;;  %v3081_v44 = vpop.f32.mrb[43].mxu1 }
 0x8fc   :  { %v1364_v45 = vadd.f32 %v1360_v43, %v1225_v19  ;;  %v1365_v46 = vsel %vm117_vm1, %v1363_v42, 0.0  ;;  %v1373_v47 = vmul.f32 %v1363_v42, %v1363_v42  ;;  %v1404_v19 = vrot.slane %v3395_v6, %v1403_v13 }
 0x8fd   :  { %1366 = vadd.xlane.f32.xlu1 %v1365_v46 }
 0x8fe   :  { %v1368_v49 = vsel %vm117_vm1, %v1364_v45, 0.0  ;;  %v1374_v50 = vmul.f32 %v1364_v45, %v1364_v45  ;;  %v1375_v3 = vsel %vm117_vm1, %v1373_v47, 0.0 }
 0x8ff   :  { %1369 = vadd.xlane.f32.xlu0 %v1368_v49 }
 0x900   :  { %v1378_v9 = vsel %vm117_vm1, %v1374_v50, 0.0 }
 0x901   :  { %1376 = vadd.xlane.f32.xlu1 %v1375_v3 }
 0x903   :  { %1379 = vadd.xlane.f32.xlu0 %v1378_v9 }
 0x98a   :  { %v1367_v52 = vpop.xlane.xlu1 %1366 }
 0x98b   :  { %v1371_v53 = vmul.f32 0.03125, %v1367_v52 }
 0x98c   :  { %v1370_v32 = vpop.xlane.xlu0 %1369 }
 0x98d   :  { %v1372_v48 = vmul.f32 0.03125, %v1370_v32  ;;  %v1383_v54 = vmul.f32 %v1371_v53, %v1371_v53  ;;  %v1387_v5 = vsub.f32 %v1363_v42, %v1371_v53 }
 0x98e   :  { %v1377_v37 = vpop.xlane.xlu1 %1376 }
 0x98f   :  { %v1381_v55 = vmul.f32 0.03125, %v1377_v37  ;;  %v1384_v57 = vmul.f32 %v1372_v48, %v1372_v48  ;;  %v1388_v15 = vsub.f32 %v1364_v45, %v1372_v48 }
 0x990   :  { %v1380_v56 = vpop.xlane.xlu0 %1379 }
 0x991   :  { %v1385_v58 = vsub.f32 %v1381_v55, %v1383_v54  ;;  %v1382_v59 = vmul.f32 0.03125, %v1380_v56 }
 0x993   :  { %v1389_v60 = vadd.f32 1e-05, %v1385_v58  ;;  %v1386_v62 = vsub.f32 %v1382_v59, %v1384_v57 }
 0x995   :  { %3347 = vrsqrt.f32 %v1389_v60  ;;  %v1390_v63 = vadd.f32 1e-05, %v1386_v62 }
 0x997   :  { %3349 = vrsqrt.f32 %v1390_v63 }
 0x99f   :  { %v3348_v14 = vpop.eup %3347 }
 0x9a0   :  { %v1393_v16 = vmul.f32 %v3348_v14, %v1387_v5 }
 0x9a1   :  { %v3350_v17 = vpop.eup %3349 }
 0x9a2   :  { %v1394_v38 = vmul.f32 %v3350_v17, %v1388_v15  ;;  %v1399_v18 = vmul.f32 %v1398_v10, %v1393_v16  ;;  %v1921_v17 = vld [vmem:[#allocation5 + $0x48] sm:$0xff] }
 0x9a4   :  { %v1400_v20 = vmul.f32 %v1398_v10, %v1394_v38  ;;  %v3905_v24 = vadd.f32 %v1404_v19, %v1399_v18 }
 0x9a6   :  { %v3907_v25 = vadd.f32 %v1404_v19, %v1400_v20 }
 0x9a8   :  { %v1430_v11 = vpack.c.bf16 %v3907_v25, %v3905_v24 }
 0x9aa   :  { %3087 = vmatmul.mubr.msk.bf16.vlgmr.msra.gmra.mrb[36].mxu0 %vm117_vm1, %v1430_v11 }
 0x9ab   :  { %3092 = vmatprep.mubr.msk.bf16.mxu0 %vm3523_vm0, %v3522_v0 }
 0xa7d   :  { %v1484_v23 = vpop.f32.mrb[36].mxu0 }
 0xa7e   :  { %v3088_v26 = vpop.f32.mrb[37].mxu0  ;;  %v1485_v30 = vadd.f32 %v1484_v23, %v1434_v22  ;;  %v1920_v23 = vld [vmem:[#allocation5 + $0x40] sm:$0xff] }
 0xa7f   :  { %v1487_v29 = vpop.f32.mrb[38].mxu0 }
 0xa80   :  { %v1488_v31 = vadd.f32 %v1487_v29, %v1434_v22  ;;  %v3089_v33 = vpop.f32.mrb[39].mxu0  ;;  %v1511_v36 = vpack.c.bf16 %v1485_v30, %v1485_v30 }
 0xa82   :  { %v3266_v35 = vpack.i.bf16 %v1488_v31, %v1485_v30  ;;  %v1512_v28 = vpack.c.bf16 %v1488_v31, %v1488_v31 }
 0xa84   :  { %3267 = vrot.lane.b32.xlu0 %v3266_v35, %s3527_s20  ;;  %3262 = vrot.lane.b32.xlu1 %v3266_v35, %s3525_s18 }
 0xa88   :  { %3272 = vrot.lane.b32.xlu1 %v3266_v35, %s3524_s3  ;;  %1569 = vrot.lane.b32.xlu0 %v1512_v28, %s3526_s19 }
 0xa8c   :  { %1520 = vrot.lane.b32.xlu1 %v1511_v36, %s3526_s19 }
 0xaf6   :  { %v3268_v8 = vpop.permute.xlu0 %3267  ;;  %v3263_v39 = vpop.permute.xlu1 %3262 }
 0xaf7   :  { %v3265_v40 = vunpack.i.h.bf16 %v3263_v39  ;;  %v3264_v41 = vunpack.i.l.bf16 %v3263_v39  ;;  %v3270_v42 = vunpack.i.h.bf16 %v3268_v8  ;;  %v3269_v43 = vunpack.i.l.bf16 %v3268_v8  ;;  %v1922_v39 = vld [vmem:[#allocation5 + $0x50] sm:$0xff] }
 0xaf9   :  { %v3924_v44 = vpack.c.bf16 %v3265_v40, %v3265_v40  ;;  %v3926_v45 = vpack.c.bf16 %v3264_v41, %v3264_v41  ;;  %v3933_v50 = vpack.c.bf16 %v3270_v42, %v3270_v42  ;;  %v3935_v3 = vpack.c.bf16 %v3269_v43, %v3269_v43  ;;  %v1923_v40 = vld [vmem:[#allocation5 + $0x58] sm:$0xff] }
 0xafa   :  { %v3273_v46 = vpop.permute.xlu1 %3272  ;;  %v1570_v47 = vpop.permute.xlu0 %1569 }
 0xafb   :  { %v1575_v49 = vsel %vm193_vm2, %v1570_v47, 0  ;;  %1618 = vrot.lane.b32.xlu1 %v3926_v45, %s3526_s19  ;;  %1667 = vrot.lane.b32.xlu0 %v3924_v44, %s3526_s19  ;;  %v3275_v9 = vunpack.i.h.bf16 %v3273_v46  ;;  %v3274_v4 = vunpack.i.l.bf16 %v3273_v46 }
 0xafc   :  { %3097 = vmatpush3.bf16.xpose.msra.mxu1 %v1575_v49 }
 0xafd   :  { %3108 = vmatprep.subr.bf16.mxu1 %v3522_v0  ;;  %v3943_v53 = vpack.c.bf16 %v3275_v9, %v3275_v9  ;;  %v3945_v32 = vpack.c.bf16 %v3274_v4, %v3274_v4 }
 0xafe   :  { %v1521_v51 = vpop.permute.xlu1 %1520 }
 0xaff   :  { %v1526_v52 = vsel %vm193_vm2, %v1521_v51, 0  ;;  %1716 = vrot.lane.b32.xlu1 %v3935_v3, %s3526_s19  ;;  %1765 = vrot.lane.b32.xlu0 %v3933_v50, %s3526_s19 }
 0xb00   :  { %3091 = vmatpush3.bf16.xpose.msra.mxu0 %v1526_v52 }
 0xb01   :  { %3102 = vmatprep.subr.bf16.mxu0 %v3522_v0 }
 0xb03   :  { %1814 = vrot.lane.b32.xlu1 %v3945_v32, %s3526_s19  ;;  %1863 = vrot.lane.b32.xlu0 %v3943_v53, %s3526_s19 }
 0xb04   :  { %3099 = vmatmul.mubr.msk.bf16.vlgmr.msra.gmra.mrb[44].mxu1 %vm193_vm2, %v1512_v28 }
 0xb05   :  { %3110 = vmatprep.mubr.msk.bf16.mxu1 %vm3523_vm0, %v3522_v0 }
 0xb07   :  { %3093 = vmatmul.mubr.msk.bf16.vlgmr.msra.gmra.mrb[40].mxu0 %vm193_vm2, %v1511_v36  ;;  %2080 = vrot.lane.b32.xlu1 %v1512_v28, %s3519_s0 }
 0xb08   :  { %2032 = vrot.lane.b32.xlu0 %v1511_v36, %s3519_s0  ;;  %3104 = vmatprep.mubr.msk.bf16.mxu0 %vm3523_vm0, %v3522_v0 }
 0xb6d   :  { %v1619_v48 = vpop.permute.xlu1 %1618  ;;  %v1668_v37 = vpop.permute.xlu0 %1667 }
 0xb6e   :  { %v1624_v54 = vsel %vm193_vm2, %v1619_v48, 0  ;;  %v1673_v55 = vsel %vm193_vm2, %v1668_v37, 0 }
 0xb6f   :  { %3103 = vmatpush3.bf16.xpose.msra.mxu0 %v1624_v54  ;;  %3109 = vmatpush3.bf16.xpose.msra.mxu1 %v1673_v55 }
 0xb70   :  { %3114 = vmatprep.subr.bf16.mxu0 %v3522_v0  ;;  %3120 = vmatprep.subr.bf16.mxu1 %v3522_v0 }
 0xb71   :  { %v1717_v56 = vpop.permute.xlu1 %1716  ;;  %v1766_v57 = vpop.permute.xlu0 %1765 }
 0xb72   :  { %v1722_v58 = vsel %vm193_vm2, %v1717_v56, 0  ;;  %v1771_v59 = vsel %vm193_vm2, %v1766_v57, 0  ;;  %v1924_v56 = vld [vmem:[#allocation5 + $0x60] sm:$0xff]  ;;  %v1925_v57 = vld [vmem:[#allocation5 + $0x68] sm:$0xff] }
 0xb75   :  { %v1815_v60 = vpop.permute.xlu1 %1814  ;;  %v1864_v62 = vpop.permute.xlu0 %1863 }
 0xb76   :  { %3105 = vmatmul.mubr.msk.bf16.vlgmr.msra.gmra.mrb[44].mxu0 %vm193_vm2, %v3926_v45  ;;  %3111 = vmatmul.mubr.msk.bf16.vlgmr.msra.gmra.mrb[48].mxu1 %vm193_vm2, %v3924_v44  ;;  %v1820_v63 = vsel %vm193_vm2, %v1815_v60, 0  ;;  %v1869_v5 = vsel %vm193_vm2, %v1864_v62, 0 }
 0xb77   :  { %3115 = vmatpush3.bf16.xpose.msra.mxu0 %v1722_v58  ;;  %3121 = vmatpush3.bf16.xpose.msra.mxu1 %v1771_v59 }
 0xb78   :  { %3116 = vmatprep.mubr.msk.bf16.mxu0 %vm3523_vm0, %v3522_v0  ;;  %3122 = vmatprep.mubr.msk.bf16.mxu1 %vm3523_vm0, %v3522_v0 }
 0xb79   :  { %3126 = vmatprep.subr.bf16.mxu0 %v3522_v0  ;;  %3132 = vmatprep.subr.bf16.mxu1 %v3522_v0  ;;  %v2081_v6 = vpop.permute.xlu1 %2080 }
 0xb7a   :  { %v2033_v10 = vpop.permute.xlu0 %2032  ;;  %v2086_v14 = vsel %vm708_vm3, %v2081_v6, 0 }
 0xb7b   :  { %v2038_v15 = vsel %vm708_vm3, %v2033_v10, 0 }
 0xb7e   :  { %3117 = vmatmul.mubr.msk.bf16.vlgmr.msra.gmra.mrb[48].mxu0 %vm193_vm2, %v3935_v3  ;;  %3123 = vmatmul.mubr.msk.bf16.vlgmr.msra.gmra.mrb[52].mxu1 %vm193_vm2, %v3933_v50 }
 0xb7f   :  { %3127 = vmatpush3.bf16.xpose.msra.mxu0 %v1820_v63  ;;  %3133 = vmatpush3.bf16.xpose.msra.mxu1 %v1869_v5 }
 0xb80   :  { %3128 = vmatprep.mubr.msk.bf16.mxu0 %vm3523_vm0, %v3522_v0  ;;  %3134 = vmatprep.mubr.msk.bf16.mxu1 %vm3523_vm0, %v3522_v0 }
 0xb81   :  { %3138 = vmatprep.subr.bf16.mxu0 %v3522_v0  ;;  %3144 = vmatprep.subr.bf16.mxu1 %v3522_v0 }
 0xb86   :  { %3129 = vmatmul.mubr.msk.bf16.vlgmr.msra.gmra.mrb[52].mxu0 %vm193_vm2, %v3945_v32  ;;  %3135 = vmatmul.mubr.msk.bf16.vlgmr.msra.gmra.mrb[56].mxu1 %vm193_vm2, %v3943_v53 }
 0xb87   :  { %3139 = vmatpush3.bf16.msra.mxu0 %v2038_v15  ;;  %3145 = vmatpush3.bf16.msra.mxu1 %v2086_v14 }
 0xb88   :  { %3140 = vmatprep.mubr.msk.bf16.mxu0 %vm3523_vm0, %v3522_v0  ;;  %3146 = vmatprep.mubr.msk.bf16.mxu1 %vm3523_vm0, %v3522_v0 }
 0xb89   :  { %3150 = vmatprep.subr.bf16.mxu0 %v3522_v0  ;;  %3156 = vmatprep.subr.bf16.mxu1 %v3522_v0 }
 0xbd7   :  { %v1611_v16 = vpop.f32.mrb[44].mxu1 }
 0xbd8   :  { %v1912_v38 = vmul.f32 0.35355338, %v1611_v16  ;;  %v3100_v18 = vpop.f32.mrb[45].mxu1 }
 0xbd9   :  { %v1614_v19 = vpop.f32.mrb[46].mxu1 }
 0xbda   :  { %v3101_v20 = vpop.f32.mrb[47].mxu1  ;;  %v1562_v11 = vpop.f32.mrb[40].mxu0  ;;  %v4000_v22 = vadd.f32 %v1921_v17, %v1912_v38  ;;  %v1926_v19 = vld [vmem:[#allocation5 + $0x70] sm:$0xff] }
 0xbdb   :  { %v1911_v26 = vmul.f32 0.35355338, %v1562_v11  ;;  %v3094_v29 = vpop.f32.mrb[41].mxu0  ;;  %v1927_v20 = vld [vmem:[#allocation5 + $0x78] sm:$0xff] }
 0xbdc   :  { %v1565_v30 = vpop.f32.mrb[42].mxu0  ;;  %v1939_v31 = vsel %vm193_vm2, %v4000_v22, -inf }
 0xbdd   :  { %1940 = vmax.xlane.f32.xlu0 %v1939_v31  ;;  %v3095_v33 = vpop.f32.mrb[43].mxu0  ;;  %v4004_v35 = vadd.f32 %v1920_v23, %v1911_v26 }
 0xbdf   :  { %v1936_v28 = vsel %vm193_vm2, %v4004_v35, -inf }
 0xbe0   :  { %1937 = vmax.xlane.f32.xlu1 %v1936_v28 }
 0xc49   :  { %v1660_v36 = vpop.f32.mrb[44].mxu0  ;;  %v1709_v8 = vpop.f32.mrb[48].mxu1 }
 0xc4a   :  { %v1913_v41 = vmul.f32 0.35355338, %v1660_v36  ;;  %v1914_v42 = vmul.f32 0.35355338, %v1709_v8  ;;  %v3106_v43 = vpop.f32.mrb[45].mxu0  ;;  %v3112_v46 = vpop.f32.mrb[49].mxu1 }
 0xc4b   :  { %v1663_v47 = vpop.f32.mrb[46].mxu0  ;;  %v1712_v49 = vpop.f32.mrb[50].mxu1 }
 0xc4c   :  { %v3107_v9 = vpop.f32.mrb[47].mxu0  ;;  %v3113_v4 = vpop.f32.mrb[51].mxu1  ;;  %v4008_v51 = vadd.f32 %v1922_v39, %v1913_v41  ;;  %v4010_v52 = vadd.f32 %v1923_v40, %v1914_v42 }
 0xc4e   :  { %v1942_v48 = vsel %vm193_vm2, %v4008_v51, -inf  ;;  %v1945_v37 = vsel %vm193_vm2, %v4010_v52, -inf }
 0xc4f   :  { %1943 = vmax.xlane.f32.xlu0 %v1942_v48  ;;  %1946 = vmax.xlane.f32.xlu1 %v1945_v37 }
 0xc51   :  { %v1758_v54 = vpop.f32.mrb[48].mxu0  ;;  %v1807_v55 = vpop.f32.mrb[52].mxu1 }
 0xc52   :  { %v1915_v58 = vmul.f32 0.35355338, %v1758_v54  ;;  %v1916_v59 = vmul.f32 0.35355338, %v1807_v55  ;;  %v3118_v60 = vpop.f32.mrb[49].mxu0  ;;  %v3124_v62 = vpop.f32.mrb[53].mxu1 }
 0xc53   :  { %v1761_v63 = vpop.f32.mrb[50].mxu0  ;;  %v1810_v5 = vpop.f32.mrb[54].mxu1 }
 0xc54   :  { %v3119_v6 = vpop.f32.mrb[51].mxu0  ;;  %v3125_v10 = vpop.f32.mrb[55].mxu1  ;;  %v4016_v14 = vadd.f32 %v1924_v56, %v1915_v58  ;;  %v1933_v15 = vadd.f32 %v1925_v57, %v1916_v59 }
 0xc56   :  { %v1948_v16 = vsel %vm193_vm2, %v4016_v14, -inf  ;;  %v1951_v17 = vsel %vm193_vm2, %v1933_v15, -inf }
 0xc57   :  { %1949 = vmax.xlane.f32.xlu0 %v1948_v16  ;;  %1952 = vmax.xlane.f32.xlu1 %v1951_v17 }
 0xc59   :  { %v1856_v38 = vpop.f32.mrb[52].mxu0  ;;  %v1905_v18 = vpop.f32.mrb[56].mxu1 }
 0xc5a   :  { %v1917_v11 = vmul.f32 0.35355338, %v1856_v38  ;;  %v1918_v23 = vmul.f32 0.35355338, %v1905_v18  ;;  %v3130_v26 = vpop.f32.mrb[53].mxu0  ;;  %v3136_v29 = vpop.f32.mrb[57].mxu1 }
 0xc5b   :  { %v1859_v30 = vpop.f32.mrb[54].mxu0  ;;  %v1908_v31 = vpop.f32.mrb[58].mxu1 }
 0xc5c   :  { %v3131_v33 = vpop.f32.mrb[55].mxu0  ;;  %v3137_v28 = vpop.f32.mrb[59].mxu1  ;;  %v1934_v36 = vadd.f32 %v1926_v19, %v1917_v11  ;;  %v1935_v8 = vadd.f32 %v1927_v20, %v1918_v23 }
 0xc5e   :  { %v1954_v39 = vsel %vm193_vm2, %v1934_v36, -inf  ;;  %v1957_v40 = vsel %vm193_vm2, %v1935_v8, -inf }
 0xc5f   :  { %1955 = vmax.xlane.f32.xlu0 %v1954_v39  ;;  %1958 = vmax.xlane.f32.xlu1 %v1957_v40 }
 0xc6a   :  { %v1941_v41 = vpop.xlane.xlu0 %1940 }
 0xc6b   :  { %v1961_v43 = vsub.f32 %v4000_v22, %v1941_v41 }
 0xc6d   :  { %v1938_v42 = vpop.xlane.xlu1 %1937  ;;  %v1970_v47 = vmul.f32 1.442695, %v1961_v43 }
 0xc6e   :  { %v1960_v46 = vsub.f32 %v4004_v35, %v1938_v42 }
 0xc6f   :  { %3351 = vpow2.f32 %v1970_v47 }
 0xc70   :  { %2128 = vrot.lane.b32.xlu1 %v3926_v45, %s3519_s0  ;;  %v1968_v49 = vmul.f32 1.442695, %v1960_v46 }
 0xc72   :  { %3353 = vpow2.f32 %v1968_v49 }
 0xc75   :  { %2176 = vrot.lane.b32.xlu0 %v3924_v44, %s3519_s0 }
 0xc79   :  { %v3352_v9 = vpop.eup %3351 }
 0xc7a   :  { %v1987_v37 = vsel %vm193_vm2, %v3352_v9, 0.0 }
 0xc7c   :  { %v3354_v4 = vpop.eup %3353 }
 0xc7d   :  { %v1984_v48 = vsel %vm193_vm2, %v3354_v4, 0.0 }
 0xc94   :  { %1985 = vadd.xlane.f32.xlu0 %v1984_v48  ;;  %1988 = vadd.xlane.f32.xlu1 %v1987_v37 }
 0xca5   :  { %2224 = vrot.lane.b32.xlu1 %v3935_v3, %s3519_s0 }
 0xcdc   :  { %v1944_v44 = vpop.xlane.xlu0 %1943  ;;  %v1947_v45 = vpop.xlane.xlu1 %1946 }
 0xcdd   :  { %v1962_v22 = vsub.f32 %v4008_v51, %v1944_v44  ;;  %v1963_v35 = vsub.f32 %v4010_v52, %v1947_v45 }
 0xcdf   :  { %v1972_v54 = vmul.f32 1.442695, %v1962_v22  ;;  %v1974_v55 = vmul.f32 1.442695, %v1963_v35 }
 0xce1   :  { %3355 = vpow2.f32 %v1972_v54 }
 0xce2   :  { %3357 = vpow2.f32 %v1974_v55 }
 0xce4   :  { %v1953_v56 = vpop.xlane.xlu1 %1952  ;;  %v1950_v16 = vpop.xlane.xlu0 %1949 }
 0xce5   :  { %v1965_v57 = vsub.f32 %v1933_v15, %v1953_v56  ;;  %v1964_v17 = vsub.f32 %v4016_v14, %v1950_v16 }
 0xce7   :  { %v1978_v58 = vmul.f32 1.442695, %v1965_v57  ;;  %v1976_v18 = vmul.f32 1.442695, %v1964_v17 }
 0xce9   :  { %3359 = vpow2.f32 %v1978_v58 }
 0xceb   :  { %v4035_v59 = vpop.eup %3355 }
 0xcec   :  { %v4037_v60 = vpop.eup %3357  ;;  %v1959_v62 = vpop.xlane.xlu1 %1958  ;;  %v1990_v3 = vsel %vm193_vm2, %v4035_v59, 0.0 }
 0xced   :  { %v1967_v63 = vsub.f32 %v1935_v8, %v1959_v62  ;;  %1991 = vadd.xlane.f32.xlu0 %v1990_v3  ;;  %v1993_v51 = vsel %vm193_vm2, %v4037_v60, 0.0  ;;  %v1956_v38 = vpop.xlane.xlu0 %1955 }
 0xcee   :  { %1994 = vadd.xlane.f32.xlu1 %v1993_v51  ;;  %v1966_v19 = vsub.f32 %v1934_v36, %v1956_v38 }
 0xcef   :  { %v1982_v52 = vmul.f32 1.442695, %v1967_v63 }
 0xcf0   :  { %v1980_v20 = vmul.f32 1.442695, %v1966_v19  ;;  %v2129_v23 = vpop.permute.xlu1 %2128 }
 0xcf1   :  { %3361 = vpow2.f32 %v1982_v52  ;;  %v2177_v11 = vpop.permute.xlu0 %2176  ;;  %v2134_v40 = vsel %vm708_vm3, %v2129_v23, 0 }
 0xcf2   :  { %3363 = vpow2.f32 %v1976_v18  ;;  %v2182_v41 = vsel %vm708_vm3, %v2177_v11, 0 }
 0xcf3   :  { %v4043_v5 = vpop.eup %3359  ;;  %3365 = vpow2.f32 %v1980_v20 }
 0xcf4   :  { %v1999_v6 = vsel %vm193_vm2, %v4043_v5, 0.0 }
 0xcf5   :  { %2000 = vadd.xlane.f32.xlu1 %v1999_v6 }
 0xcfb   :  { %v4047_v10 = vpop.eup %3361 }
 0xcfc   :  { %v2005_v15 = vsel %vm193_vm2, %v4047_v10, 0.0  ;;  %v4056_v26 = vpop.eup %3363 }
 0xcfd   :  { %2006 = vadd.xlane.f32.xlu1 %v2005_v15  ;;  %v4060_v31 = vpop.eup %3365 }
 0xd03   :  { %2272 = vrot.lane.b32.xlu0 %v3933_v50, %s3519_s0  ;;  %v1996_v50 = vsel %vm193_vm2, %v4056_v26, 0.0 }
 0xd0e   :  { %2320 = vrot.lane.b32.xlu1 %v3945_v32, %s3519_s0  ;;  %v2002_v32 = vsel %vm193_vm2, %v4060_v31, 0.0 }
 0xd21   :  { %v1986_v29 = vpop.xlane.xlu0 %1985  ;;  %v1989_v30 = vpop.xlane.xlu1 %1988 }
 0xd22   :  { %3367 = vrcp.f32 %v1986_v29  ;;  %1997 = vadd.xlane.f32.xlu0 %v1996_v50 }
 0xd23   :  { %3369 = vrcp.f32 %v1989_v30 }
 0xd25   :  { %v2225_v42 = vpop.permute.xlu1 %2224 }
 0xd26   :  { %2003 = vadd.xlane.f32.xlu0 %v2002_v32  ;;  %v2230_v22 = vsel %vm708_vm3, %v2225_v42, 0 }
 0xd2c   :  { %v3368_v14 = vpop.eup %3367 }
 0xd2d   :  { %v3370_v33 = vpop.eup %3369  ;;  %v2016_v28 = vmul.f32 %v3368_v14, %v3354_v4 }
 0xd2e   :  { %v2017_v36 = vmul.f32 %v3370_v33, %v3352_v9 }
 0xd2f   :  { %v2024_v8 = vpack.c.bf16 %v2016_v28, %v2016_v28 }
 0xd30   :  { %v2025_v39 = vpack.c.bf16 %v2017_v36, %v2017_v36 }
 0xd31   :  { %3141 = vmatmul.mubr.msk.bf16.vlgmr.msra.gmra.mrb[56].mxu0 %vm193_vm2, %v2024_v8 }
 0xd32   :  { %3147 = vmatmul.mubr.msk.bf16.vlgmr.msra.gmra.mrb[60].mxu1 %vm193_vm2, %v2025_v39  ;;  %3151 = vmatpush3.bf16.msra.mxu0 %v2134_v40 }
 0xd33   :  { %3157 = vmatpush3.bf16.msra.mxu1 %v2182_v41  ;;  %3152 = vmatprep.mubr.msk.bf16.mxu0 %vm3523_vm0, %v3522_v0 }
 0xd34   :  { %3158 = vmatprep.mubr.msk.bf16.mxu1 %vm3523_vm0, %v3522_v0  ;;  %3162 = vmatprep.subr.bf16.mxu0 %v3522_v0 }
 0xd35   :  { %3168 = vmatprep.subr.bf16.mxu1 %v3522_v0 }
 0xd3c   :  { %2368 = vrot.lane.b32.xlu0 %v3943_v53, %s3519_s0  ;;  %s2782_s0 = sshll.u32 %s3530_s28, 4  ;;  %s2783_s0 = int_to_ptr.vmem [resolvable:$true] %s2782_s0 }
 0xd3d   :  { %s3484_s21 = scalar_lea.vmem %s2783_s0, 256  ;;  %p3489_p5 = scmp.lt.s32.totalorder %s2783_s0, %s2783_s0 }
 0xd3e   :  { %p3485_p4 = scmp.ne.s32.totalorder %s2783_s0, %s3484_s21  ;;  %p3490_p6 = scmp.lt.s32.totalorder %s3484_s21, %s3484_s21 }
 0xd40   :  { %p3491_p7 = por %p3490_p6, %p3489_p5 }
 0xd42   :  { %p3492_p8 = pnand %p3491_p7, %p3485_p4 }
 0xd7a   :  { %v1992_v43 = vpop.xlane.xlu0 %1991 }
 0xd7b   :  { %3371 = vrcp.f32 %v1992_v43  ;;  %v1995_v46 = vpop.xlane.xlu1 %1994  ;;  %v3303_v43 = vld [vmem:[#allocation7 + $0x60] sm:$0xff]  }
 0xd7c   :  { %3373 = vrcp.f32 %v1995_v46 }
 0xd7e   :  { %v2273_v37 = vpop.permute.xlu0 %2272 }
 0xd7f   :  { %v2278_v53 = vsel %vm708_vm3, %v2273_v37, 0 }
 0xd82   :  { %v2001_v47 = vpop.xlane.xlu1 %2000 }
 0xd83   :  { %3375 = vrcp.f32 %v2001_v47 }
 0xd85   :  { %v3372_v49 = vpop.eup %3371 }
 0xd86   :  { %v3374_v9 = vpop.eup %3373  ;;  %v2018_v4 = vmul.f32 %v3372_v49, %v4035_v59 }
 0xd87   :  { %v2019_v48 = vmul.f32 %v3374_v9, %v4037_v60 }
 0xd88   :  { %v2026_v44 = vpack.c.bf16 %v2018_v4, %v2018_v4 }
 0xd89   :  { %v2027_v45 = vpack.c.bf16 %v2019_v48, %v2019_v48  ;;  %v3304_v48 = vld [vmem:[#allocation7 + $0x68] sm:$0xff]  }
 0xd8a   :  { %3153 = vmatmul.mubr.msk.bf16.vlgmr.msra.gmra.mrb[60].mxu0 %vm193_vm2, %v2026_v44  ;;  %v2007_v56 = vpop.xlane.xlu1 %2006 }
 0xd8b   :  { %3159 = vmatmul.mubr.msk.bf16.vlgmr.msra.gmra.mrb[64].mxu1 %vm193_vm2, %v2027_v45  ;;  %3163 = vmatpush3.bf16.msra.mxu0 %v2230_v22  ;;  %3377 = vrcp.f32 %v2007_v56 }
 0xd8c   :  { %3169 = vmatpush3.bf16.msra.mxu1 %v2278_v53  ;;  %3170 = vmatprep.mubr.msk.bf16.mxu1 %vm3523_vm0, %v3522_v0 }
 0xd8d   :  { %3180 = vmatprep.subr.bf16.mxu1 %v3522_v0  ;;  %3164 = vmatprep.mubr.msk.bf16.mxu0 %vm3523_vm0, %v3522_v0  ;;  %v3376_v35 = vpop.eup %3375 }
 0xd8e   :  { %3174 = vmatprep.subr.bf16.mxu0 %v3522_v0  ;;  %v2021_v54 = vmul.f32 %v3376_v35, %v4043_v5  ;;  %v2321_v5 = vpop.permute.xlu1 %2320 }
 0xd90   :  { %v2029_v55 = vpack.c.bf16 %v2021_v54, %v2021_v54 }
 0xd93   :  { %3171 = vmatmul.mubr.msk.bf16.vlgmr.msra.gmra.mrb[68].mxu1 %vm193_vm2, %v2029_v55 }
 0xd94   :  { %3182 = vmatprep.mubr.msk.bf16.mxu1 %vm3523_vm0, %v3522_v0 }
 0xd95   :  { %v3378_v58 = vpop.eup %3377 }
 0xd96   :  { %v2023_v60 = vmul.f32 %v3378_v58, %v4047_v10  ;;  %v2326_v10 = vsel %vm708_vm3, %v2321_v5, 0 }
 0xd98   :  { %v2031_v51 = vpack.c.bf16 %v2023_v60, %v2023_v60 }
 0xdaf   :  { %v1998_v57 = vpop.xlane.xlu0 %1997 }
 0xdb0   :  { %3379 = vrcp.f32 %v1998_v57 }
 0xdb3   :  { %v2004_v59 = vpop.xlane.xlu0 %2003 }
 0xdb4   :  { %3381 = vrcp.f32 %v2004_v59 }
 0xdb7   :  { %v2369_v62 = vpop.permute.xlu0 %2368 }
 0xdb8   :  { %v2374_v3 = vsel %vm708_vm3, %v2369_v62, 0 }
 0xdb9   :  { %3181 = vmatpush3.bf16.msra.mxu1 %v2374_v3 }
 0xdba   :  { %v3380_v63 = vpop.eup %3379  ;;  %3194 = vmatprep.subr.bf16.mxu1 %v3522_v0 }
 0xdbb   :  { %v2020_v52 = vmul.f32 %v3380_v63, %v4056_v26 }
 0xdbc   :  { %3183 = vmatmul.mubr.msk.bf16.vlgmr.msra.gmra.mrb[72].mxu1 %vm193_vm2, %v2031_v51 }
 0xdbd   :  { %v2028_v6 = vpack.c.bf16 %v2020_v52, %v2020_v52  ;;  %3198 = vmatprep.mubr.msk.bf16.mxu1 %vm3523_vm0, %v3522_v0 }
 0xdbe   :  { %v3382_v15 = vpop.eup %3381 }
 0xdbf   :  { %3165 = vmatmul.mubr.msk.bf16.vlgmr.msra.gmra.mrb[64].mxu0 %vm193_vm2, %v2028_v6  ;;  %v2022_v16 = vmul.f32 %v3382_v15, %v4060_v31 }
 0xdc0   :  { %3175 = vmatpush3.bf16.msra.mxu0 %v2326_v10  ;;  %3176 = vmatprep.mubr.msk.bf16.mxu0 %vm3523_vm0, %v3522_v0 }
 0xdc1   :  { %3186 = vmatprep.subr.bf16.mxu0 %v3522_v0  ;;  %v2030_v17 = vpack.c.bf16 %v2022_v16, %v2022_v16 }
 0xdc7   :  { %3177 = vmatmul.mubr.msk.bf16.vlgmr.msra.gmra.mrb[68].mxu0 %vm193_vm2, %v2030_v17 }
 0xdc8   :  { %3190 = vmatprep.mubr.msk.bf16.mxu0 %vm3523_vm0, %v3522_v0  ;;  %3187 = vmatpush3.bf16.msra.mxu0 %v3303_v43 }
 0xdc9   :  { %3188 = vmatprep.subr.bf16.mxu0 %v3522_v0 }
 0xdcc   :  { %3189 = vmatpush3.bf16.msra.mxu0 %v3304_v48 }
 0xdcd   :  { %3202 = vmatprep.subr.bf16.mxu0 %v3522_v0 }
 0xe04   :  { %v2074_v38 = vpop.f32.mrb[56].mxu0 }
 0xe05   :  { %v2122_v18 = vpop.f32.mrb[60].mxu1  ;;  %v3142_v19 = vpop.f32.mrb[57].mxu0 }
 0xe06   :  { %v3148_v20 = vpop.f32.mrb[61].mxu1  ;;  %v2077_v11 = vpop.f32.mrb[58].mxu0 }
 0xe07   :  { %v2125_v23 = vpop.f32.mrb[62].mxu1  ;;  %v3143_v26 = vpop.f32.mrb[59].mxu0 }
 0xe08   :  { %v3149_v29 = vpop.f32.mrb[63].mxu1 }
 0xe5d   :  { %v2170_v30 = vpop.f32.mrb[60].mxu0 }
 0xe5e   :  { %v2218_v50 = vpop.f32.mrb[64].mxu1  ;;  %v3154_v32 = vpop.f32.mrb[61].mxu0 }
 0xe5f   :  { %v3276_v31 = vpack.i.bf16 %v2218_v50, %v2170_v30  ;;  %v3160_v14 = vpop.f32.mrb[65].mxu1  ;;  %v2173_v33 = vpop.f32.mrb[62].mxu0 }
 0xe60   :  { %v2221_v28 = vpop.f32.mrb[66].mxu1  ;;  %v3155_v36 = vpop.f32.mrb[63].mxu0 }
 0xe61   :  { %3277 = vrot.lane.b32.xlu1 %v3276_v31, %s3517_s6  ;;  %v3161_v8 = vpop.f32.mrb[67].mxu1  ;;  %v3305_v36 = vld [vmem:[#allocation7 + $0x70] sm:$0xff]  }
 0xe62   :  { %3195 = vmatpush3.bf16.msra.mxu1 %v3305_v36  ;;  %v3308_v8 = vld [vmem:[#allocation7 + $0x88] sm:$0xff]  }
 0xe63   :  { %3196 = vmatprep.subr.bf16.mxu1 %v3522_v0 }
 0xe66   :  { %v2314_v39 = vpop.f32.mrb[68].mxu1 }
 0xe67   :  { %v3172_v40 = vpop.f32.mrb[69].mxu1 }
 0xe68   :  { %v2317_v41 = vpop.f32.mrb[70].mxu1 }
 0xe69   :  { %v3173_v42 = vpop.f32.mrb[71].mxu1 }
 0xe8f   :  { %v2410_v46 = vpop.f32.mrb[72].mxu1 }
 0xe90   :  { %v3184_v47 = vpop.f32.mrb[73].mxu1 }
 0xe91   :  { %v2413_v49 = vpop.f32.mrb[74].mxu1 }
 0xe92   :  { %v2266_v9 = vpop.f32.mrb[64].mxu0  ;;  %v3185_v4 = vpop.f32.mrb[75].mxu1 }
 0xe93   :  { %v3281_v37 = vpack.i.bf16 %v2314_v39, %v2266_v9  ;;  %v3166_v44 = vpop.f32.mrb[65].mxu0 }
 0xe94   :  { %v2269_v45 = vpop.f32.mrb[66].mxu0 }
 0xe95   :  { %v3167_v22 = vpop.f32.mrb[67].mxu0  ;;  %3282 = vrot.lane.b32.xlu0 %v3281_v37, %s3528_s22 }
 0xe9a   :  { %v2362_v53 = vpop.f32.mrb[68].mxu0 }
 0xe9b   :  { %v3286_v35 = vpack.i.bf16 %v2410_v46, %v2362_v53  ;;  %v3178_v54 = vpop.f32.mrb[69].mxu0 }
 0xe9c   :  { %v2365_v55 = vpop.f32.mrb[70].mxu0  ;;  %v2542_v54 = vrot.slane %v3914_v21, %v1216_v1  ;;  %v2555_v1 = vrot.slane %v3914_v21, %v1229_v61 }
 0xe9d   :  { %v3179_v56 = vpop.f32.mrb[71].mxu0  ;;  %3287 = vrot.lane.b32.xlu1 %v3286_v35, %s3529_s23 }
 0xed3   :  { %v3278_v57 = vpop.permute.xlu1 %3277 }
 0xed4   :  { %v3280_v59 = vunpack.i.h.bf16 %v3278_v57  ;;  %v3279_v60 = vunpack.i.l.bf16 %v3278_v57 }
 0xed6   :  { %v2441_v51 = vsel %vm193_vm2, %v2122_v18, %v3280_v59  ;;  %v2440_v52 = vsel %vm193_vm2, %v2074_v38, %v3279_v60  ;;  %v2450_v38 = vrot.slane %v3914_v21, %v1123_v34  ;;  %v2548_v59 = vrot.slane %v3914_v21, %v1222_v12 }
 0xf07   :  { %v3283_v58 = vpop.permute.xlu0 %3282 }
 0xf08   :  { %v3285_v62 = vunpack.i.h.bf16 %v3283_v58  ;;  %v3284_v3 = vunpack.i.l.bf16 %v3283_v58 }
 0xf0a   :  { %v2443_v15 = vsel %vm1114_vm4, %v2441_v51, %v3285_v62  ;;  %v2442_v10 = vsel %vm1114_vm4, %v2440_v52, %v3284_v3  ;;  %v3309_v51 = vld [vmem:[#allocation7 + $0x90] sm:$0xff]   ;;  %v3310_v52 = vld [vmem:[#allocation7 + $0x98] sm:$0xff]  }
 0xf0f   :  { %v3288_v63 = vpop.permute.xlu1 %3287 }
 0xf10   :  { %v3290_v5 = vunpack.i.h.bf16 %v3288_v63  ;;  %v3289_v6 = vunpack.i.l.bf16 %v3288_v63 }
 0xf12   :  { %v2445_v16 = vsel %vm1117_vm5, %v2443_v15, %v3290_v5  ;;  %v2444_v17 = vsel %vm1117_vm5, %v2442_v10, %v3289_v6 }
 0xf13   :  { %v2446_v19 = vpack.c.bf16 %v2445_v16, %v2444_v17 }
 0xf15   :  { %3191 = vmatmul.mubr.msk.bf16.vlgmr.msra.gmra.mrb[72].mxu0 %vm117_vm1, %v2446_v19 }
 0xf16   :  { %3210 = vmatprep.mubr.msk.bf16.mxu0 %vm3523_vm0, %v3522_v0 }
 0xfe8   :  { %v2500_v18 = vpop.f32.mrb[72].mxu0 }
 0xfe9   :  { %v2501_v20 = vadd.f32 %v2500_v18, %v2450_v38  ;;  %v3192_v11 = vpop.f32.mrb[73].mxu0 }
 0xfea   :  { %v2503_v23 = vpop.f32.mrb[74].mxu0 }
 0xfeb   :  { %v2507_v26 = vadd.f32 %v2501_v20, %v3905_v24  ;;  %v2504_v29 = vadd.f32 %v2503_v23, %v2450_v38  ;;  %v3193_v30 = vpop.f32.mrb[75].mxu0  ;;  %v3306_v24 = vld [vmem:[#allocation7 + $0x78] sm:$0xff]  }
 0xfec   :  { %3197 = vmatpush3.bf16.msra.mxu1 %v3306_v24 }
 0xfed   :  { %v2508_v50 = vadd.f32 %v2504_v29, %v3907_v25  ;;  %v2509_v32 = vsel %vm117_vm1, %v2507_v26, 0.0  ;;  %v2517_v31 = vmul.f32 %v2507_v26, %v2507_v26  ;;  %v3307_v25 = vld [vmem:[#allocation7 + $0x80] sm:$0xff]  }
 0xfee   :  { %2510 = vadd.xlane.f32.xlu0 %v2509_v32  ;;  %3203 = vmatpush3.bf16.msra.mxu0 %v3307_v25 }
 0xfef   :  { %v2512_v14 = vsel %vm117_vm1, %v2508_v50, 0.0  ;;  %v2519_v33 = vsel %vm117_vm1, %v2517_v31, 0.0  ;;  %v2518_v34 = vmul.f32 %v2508_v50, %v2508_v50  ;;  %3204 = vmatprep.subr.bf16.mxu0 %v3522_v0 }
 0xff0   :  { %2513 = vadd.xlane.f32.xlu1 %v2512_v14 }
 0xff1   :  { %v2522_v28 = vsel %vm117_vm1, %v2518_v34, 0.0 }
 0xff2   :  { %2520 = vadd.xlane.f32.xlu0 %v2519_v33  ;;  %3205 = vmatpush3.bf16.msra.mxu0 %v3308_v8 }
 0xff3   :  { %3206 = vmatprep.subr.bf16.mxu0 %v3522_v0 }
 0xff6   :  { %2523 = vadd.xlane.f32.xlu0 %v2522_v28  ;;  %3207 = vmatpush3.bf16.msra.mxu0 %v3309_v51 }
 0xff7   :  { %3208 = vmatprep.subr.bf16.mxu0 %v3522_v0  ;;  %v2618_v0 = vrot.slane %v3914_v21, %v1292_v27 }
 0xffa   :  { %3209 = vmatpush3.bf16.msra.mxu0 %v3310_v52 }
0x107b   :  { %v2511_v39 = vpop.xlane.xlu0 %2510 }
0x107c   :  { %v2515_v40 = vmul.f32 0.03125, %v2511_v39 }
0x107d   :  { %v2514_v41 = vpop.xlane.xlu1 %2513 }
0x107e   :  { %v2527_v43 = vmul.f32 %v2515_v40, %v2515_v40  ;;  %v2516_v46 = vmul.f32 0.03125, %v2514_v41  ;;  %v2531_v22 = vsub.f32 %v2507_v26, %v2515_v40 }
0x107f   :  { %v2521_v42 = vpop.xlane.xlu0 %2520 }
0x1080   :  { %v2525_v47 = vmul.f32 0.03125, %v2521_v42  ;;  %v2528_v4 = vmul.f32 %v2516_v46, %v2516_v46  ;;  %v2532_v55 = vsub.f32 %v2508_v50, %v2516_v46 }
0x1082   :  { %v2529_v49 = vsub.f32 %v2525_v47, %v2527_v43 }
0x1083   :  { %v2524_v9 = vpop.xlane.xlu0 %2523 }
0x1084   :  { %v2533_v48 = vadd.f32 1e-05, %v2529_v49  ;;  %v2526_v37 = vmul.f32 0.03125, %v2524_v9 }
0x1086   :  { %3383 = vrsqrt.f32 %v2533_v48  ;;  %v2530_v44 = vsub.f32 %v2526_v37, %v2528_v4  ;;  %v2722_v4 = vrot.slane %v3914_v21, %v1397_v2 }
0x1088   :  { %v2534_v45 = vadd.f32 1e-05, %v2530_v44 }
0x108a   :  { %3385 = vrsqrt.f32 %v2534_v45  ;;  %v2728_v45 = vrot.slane %v3914_v21, %v1403_v13 }
0x1090   :  { %v3384_v53 = vpop.eup %3383 }
0x1091   :  { %v2537_v35 = vmul.f32 %v3384_v53, %v2531_v22 }
0x1093   :  { %v2543_v58 = vmul.f32 %v2542_v54, %v2537_v35 }
0x1094   :  { %v3386_v56 = vpop.eup %3385 }
0x1095   :  { %v2538_v57 = vmul.f32 %v3386_v56, %v2532_v55  ;;  %v2549_v62 = vadd.f32 %v2548_v59, %v2543_v58 }
0x1097   :  { %v2544_v60 = vmul.f32 %v2542_v54, %v2538_v57 }
0x1099   :  { %v2550_v3 = vadd.f32 %v2548_v59, %v2544_v60 }
0x109b   :  { %v2551_v63 = vpack.c.bf16 %v2550_v3, %v2549_v62 }
0x109d   :  { %3199 = vmatmul.mubr.msk.bf16.vlgmr.msra.gmra.mrb[76].mxu1 %vm117_vm1, %v2551_v63 }
0x1170   :  { %v2605_v5 = vpop.f32.mrb[76].mxu1 }
0x1171   :  { %v2606_v6 = vadd.f32 %v2605_v5, %v2555_v1  ;;  %v3200_v15 = vpop.f32.mrb[77].mxu1 }
0x1172   :  { %v2608_v12 = vpop.f32.mrb[78].mxu1 }
0x1173   :  { %v2609_v10 = vadd.f32 %v2608_v12, %v2555_v1  ;;  %v3201_v16 = vpop.f32.mrb[79].mxu1  ;;  %v2612_v17 = vmax.f32 %v2606_v6, 0.0 }
0x1175   :  { %v2613_v19 = vmax.f32 %v2609_v10, 0.0 }
0x1177   :  { %v2614_v38 = vpack.c.bf16 %v2613_v19, %v2612_v17 }
0x1179   :  { %3211 = vmatmul.mubr.msk.bf16.vlgmr.msra.gmra.mrb[76].mxu0 %vm1318_vm6, %v2614_v38  ;;  %v2856_v38 = vld [vmem:[%s4190_s4] ss:$0 sm:$0xff] }
0x124c   :  { %v2680_v18 = vpop.f32.mrb[76].mxu0 }
0x124d   :  { %v2681_v20 = vadd.f32 %v2680_v18, %v2618_v0  ;;  %v3212_v11 = vpop.f32.mrb[77].mxu0 }
0x124e   :  { %v2683_v23 = vpop.f32.mrb[78].mxu0  ;;  %v2857_v11 = vld [vmem:[%s4190_s4 + $0x1] ss:$0 sm:$0xff] }
0x124f   :  { %v2687_v61 = vadd.f32 %v2681_v20, %v2549_v62  ;;  %v2684_v26 = vadd.f32 %v2683_v23, %v2618_v0  ;;  %v3213_v29 = vpop.f32.mrb[79].mxu0 }
0x1251   :  { %v2688_v30 = vadd.f32 %v2684_v26, %v2550_v3  ;;  %v2689_v50 = vsel %vm117_vm1, %v2687_v61, 0.0  ;;  %v2697_v32 = vmul.f32 %v2687_v61, %v2687_v61 }
0x1252   :  { %2690 = vadd.xlane.f32.xlu1 %v2689_v50 }
0x1253   :  { %v2692_v31 = vsel %vm117_vm1, %v2688_v30, 0.0  ;;  %v2698_v14 = vmul.f32 %v2688_v30, %v2688_v30  ;;  %v2699_v33 = vsel %vm117_vm1, %v2697_v32, 0.0 }
0x1254   :  { %2693 = vadd.xlane.f32.xlu0 %v2692_v31 }
0x1255   :  { %v2702_v27 = vsel %vm117_vm1, %v2698_v14, 0.0 }
0x1256   :  { %2700 = vadd.xlane.f32.xlu1 %v2699_v33 }
0x1258   :  { %2703 = vadd.xlane.f32.xlu0 %v2702_v27 }
0x12df   :  { %v2691_v34 = vpop.xlane.xlu1 %2690 }
0x12e0   :  { %v2695_v28 = vmul.f32 0.03125, %v2691_v34 }
0x12e1   :  { %v2694_v36 = vpop.xlane.xlu0 %2693 }
0x12e2   :  { %v2696_v24 = vmul.f32 0.03125, %v2694_v36  ;;  %v2707_v8 = vmul.f32 %v2695_v28, %v2695_v28  ;;  %v2711_v9 = vsub.f32 %v2687_v61, %v2695_v28 }
0x12e3   :  { %v2701_v25 = vpop.xlane.xlu1 %2700 }
0x12e4   :  { %v2705_v39 = vmul.f32 0.03125, %v2701_v25  ;;  %v2708_v41 = vmul.f32 %v2696_v24, %v2696_v24  ;;  %v2712_v37 = vsub.f32 %v2688_v30, %v2696_v24 }
0x12e5   :  { %v2704_v40 = vpop.xlane.xlu0 %2703 }
0x12e6   :  { %v2709_v42 = vsub.f32 %v2705_v39, %v2707_v8  ;;  %v2706_v43 = vmul.f32 0.03125, %v2704_v40 }
0x12e8   :  { %v2713_v46 = vadd.f32 1e-05, %v2709_v42  ;;  %v2710_v47 = vsub.f32 %v2706_v43, %v2708_v41 }
0x12ea   :  { %3387 = vrsqrt.f32 %v2713_v46  ;;  %v2714_v49 = vadd.f32 1e-05, %v2710_v47 }
0x12ec   :  { %3389 = vrsqrt.f32 %v2714_v49 }
0x12f4   :  { %v3388_v48 = vpop.eup %3387 }
0x12f5   :  { %v2717_v44 = vmul.f32 %v3388_v48, %v2711_v9 }
0x12f6   :  { %v3390_v22 = vpop.eup %3389 }
0x12f7   :  { %v2723_v53 = vmul.f32 %v2722_v4, %v2717_v44  ;;  %v2718_v35 = vmul.f32 %v3390_v22, %v2712_v37 }
0x12f9   :  { %v2729_v54 = vadd.f32 %v2728_v45, %v2723_v53  ;;  %v2724_v55 = vmul.f32 %v2722_v4, %v2718_v35 }
0x12fb   :  { %v2733_v56 = vsel %vm117_vm1, %v2729_v54, 0.0  ;;  %v2730_v57 = vadd.f32 %v2728_v45, %v2724_v55  ;;  %v2741_v58 = vmul.f32 %v2729_v54, %v2729_v54 }
0x12fc   :  { %2734 = vadd.xlane.f32.xlu1 %v2733_v56 }
0x12fd   :  { %v2736_v59 = vsel %vm117_vm1, %v2730_v57, 0.0  ;;  %v2742_v2 = vmul.f32 %v2730_v57, %v2730_v57  ;;  %v2743_v60 = vsel %vm117_vm1, %v2741_v58, 0.0 }
0x12fe   :  { %2737 = vadd.xlane.f32.xlu0 %v2736_v59 }
0x12ff   :  { %v2746_v7 = vsel %vm117_vm1, %v2742_v2, 0.0 }
0x1300   :  { %2744 = vadd.xlane.f32.xlu1 %v2743_v60 }
0x1302   :  { %2747 = vadd.xlane.f32.xlu0 %v2746_v7 }
0x1389   :  { %v2735_v13 = vpop.xlane.xlu1 %2734 }
0x138a   :  { %v2739_v21 = vmul.f32 0.03125, %v2735_v13 }
0x138b   :  { %v2738_v62 = vpop.xlane.xlu0 %2737 }
0x138c   :  { %v2740_v3 = vmul.f32 0.03125, %v2738_v62  ;;  %v2751_v51 = vmul.f32 %v2739_v21, %v2739_v21  ;;  %v2755_v17 = vsub.f32 %v2729_v54, %v2739_v21 }
0x138d   :  { %v2745_v63 = vpop.xlane.xlu1 %2744 }
0x138e   :  { %v2749_v52 = vmul.f32 0.03125, %v2745_v63  ;;  %v2752_v5 = vmul.f32 %v2740_v3, %v2740_v3  ;;  %v2756_v0 = vsub.f32 %v2730_v57, %v2740_v3 }
0x138f   :  { %v2748_v1 = vpop.xlane.xlu0 %2747 }
0x1390   :  { %v2753_v6 = vsub.f32 %v2749_v52, %v2751_v51  ;;  %v2750_v15 = vmul.f32 0.03125, %v2748_v1 }
0x1392   :  { %v2757_v12 = vadd.f32 1e-05, %v2753_v6  ;;  %v2754_v10 = vsub.f32 %v2750_v15, %v2752_v5 }
0x1394   :  { %3391 = vrsqrt.f32 %v2757_v12  ;;  %v2758_v16 = vadd.f32 1e-05, %v2754_v10 }
0x1396   :  { %3393 = vrsqrt.f32 %v2758_v16 }
0x139e   :  { %v3392_v19 = vpop.eup %3391 }
0x139f   :  { %v2761_v18 = vmul.f32 %v3392_v19, %v2755_v17 }
0x13a0   :  { %v3394_v20 = vpop.eup %3393 }
0x13a1   :  { %v2762_v23 = vmul.f32 %v3394_v20, %v2756_v0  ;;  %v2767_v61 = vmul.f32 %v2856_v38, %v2761_v18 }
0x13a3   :  { %v2768_v26 = vmul.f32 %v2856_v38, %v2762_v23  ;;  %v2773_v29 = vadd.f32 %v2857_v11, %v2767_v61 }
0x13a5   :  { %v2774_v30 = vadd.f32 %v2857_v11, %v2768_v26  ;;  %2775 = vst.msk [vmem:[#allocation10] sm:$0xff] %vm117_vm1, %v2773_v29 }
0x13a7   :  { %2776 = vst.msk [vmem:[#allocation10 + $0x8] sm:$0xff] %vm117_vm1, %v2774_v30 }
0x13a8   :  { %3495 = shalt.err (!%p3492_p8)
}
0x13a9   :  { %s3496_s7 = scalar_lea.hbm %s4191_s5, 256 }
0x13aa   :  { %p3497_p9 = scmp.ne.s32.totalorder %s4191_s5, %s3496_s7  ;;  %p3500_p10 = scmp.lt.u32.totalorder %s3496_s7, %s4191_s5 }
0x13ac   :  { %p3502_p11 = pnand %p3500_p10, %p3497_p9 }
0x13ae   :  { %3505 = shalt.err (!%p3502_p11)
}
0x13af   :  { %2788 = dma.vmem_to_hbm [thread:$0]  %s2783_s0, 256, %s4191_s5, [#allocation4], %s3516_s30, %s3516_s30, %s3517_s6  }
0x13b0   :  { %3512 = dma.done.wait [#allocation4], 256  }
0x13b1   :  { %3513 = vsyncadd [#allocation4], 4294967040 }
0x13b2   :  { %2792 = vsyncpa [#allocation3], 1 }
0x13b3   :  { %2793 = vsyncpa [#allocation6], 1 }
0x13b4   :  { %2794 = vsyncpa [#allocation9], 1 }
0x13b5   :  { %2795 = vsyncpa [#allocation4], 1 }

</bundles_post_ra>
